<compile_context>
chip_gen: v7x
topology: tpu7x:2x2x1
jax: 0.10.0
libtpu: 0.0.40
codegen_flags: <defaults>
</compile_context>

<pallas_src>
import functools

import jax
import jax.numpy as jnp
import numpy as np
from jax.experimental import pallas as pl
from jax.experimental.pallas import tpu as pltpu


# ---------------------------------------------------------------------------
# Helpers
# ---------------------------------------------------------------------------
def _adaptive_bins(in_size, out_size):
    """PyTorch AdaptiveAvgPool2d bin boundaries [start_e, end_e) per output."""
    starts = [(e * in_size) // out_size for e in range(out_size)]
    ends = [-(-((e + 1) * in_size) // out_size) for e in range(out_size)]
    return starts, ends


def _round_up(x, m):
    return -(-x // m) * m


# ---------------------------------------------------------------------------
# Fused kernel: conv7x7/s2 (space-to-depth + column-tap-packed K=48 matmuls)
#               + BN shift + ReLU + MaxPool2d(3,2,1) + AdaptiveAvgPool2d((E,E))
# One image per grid step.  x is flattened (H2*W2p, 48); ybuf (Ho*W2p, C).
# ---------------------------------------------------------------------------
def _make_fused_kernel(*, Ho, Wo, W2p, Hp, E, R):
    nblk = -(-Ho // R)

    def kernel(x_ref, w_ref, shift_ref, pw_ref, rw_ref, o_ref,
               ybuf_ref, contrib_ref):
        C = o_ref.shape[-1]
        shift = shift_ref[...]                                   # (1, C) f32

        # ---- Phase 1: conv = 4 K=48 bf16 MXU dots per R-row block ---------
        def conv_block(b, carry):
            i0 = jnp.minimum(b * R, Ho - R)                      # clamp tail

            def slab(p):                                         # (R*W2p, 48)
                start = pl.multiple_of((i0 + p) * W2p, 16)
                return x_ref[pl.ds(start, R * W2p), :]

            acc = jnp.dot(slab(0), w_ref[0],
                          preferred_element_type=jnp.float32)
            for p in range(1, 4):
                acc = acc + jnp.dot(slab(p), w_ref[p],
                                    preferred_element_type=jnp.float32)
            ostart = pl.multiple_of(i0 * W2p, 16)
            ybuf_ref[pl.ds(ostart, R * W2p), :] = jnp.maximum(acc + shift, 0.0)
            return carry

        jax.lax.fori_loop(0, nblk, conv_block, 0, unroll=2)

        # ---- Phase 2: MaxPool2d(3,2,1) + adaptive-avg column binning ------
        pw = pw_ref[...]                                         # (E, W2p) f32
        col = jax.lax.broadcasted_iota(jnp.int32, (W2p, C), 0)
        col_valid = col < Wo                                     # hoisted
        zrow = jnp.zeros((1, C), jnp.float32)

        def pool_row(q, carry):
            r = 2 * q
            rm1 = jnp.maximum(r - 1, 0)                          # top pad
            rp1 = jnp.minimum(r + 1, Ho - 1)                     # bottom pad

            def row(idx):                                        # (W2p, C) f32
                start = pl.multiple_of(idx * W2p, 16)
                return ybuf_ref[pl.ds(start, W2p), :]

            v = jnp.maximum(row(r), jnp.maximum(row(rm1), row(rp1)))
            v = jnp.where(col_valid, v, 0.0)                     # drop junk cols
            # 3-wide column max; values are >=0 (post-ReLU) so a 0 edge fill
            # is exactly equivalent to PyTorch's -inf maxpool padding.
            left = jnp.concatenate([zrow, v[:-1, :]], axis=0)    # v[j-1]
            right = jnp.concatenate([v[1:, :], zrow], axis=0)    # v[j+1]
            z = jnp.maximum(v, jnp.maximum(left, right))         # (W2p, C)
            # Column binning (even/window-centre columns, 1/width weights).
            contrib_ref[q] = jnp.dot(pw, z,
                                     preferred_element_type=jnp.float32)
            return carry

        jax.lax.fori_loop(0, Hp, pool_row, 0)

        # ---- Phase 3: adaptive-avg row binning as E tiny MXU matmuls ------
        rw = rw_ref[...]                                         # (E, Hp) f32
        for f in range(E):
            o_ref[f] = jnp.dot(rw, contrib_ref[:, f, :],
                               preferred_element_type=jnp.float32
                               ).astype(o_ref.dtype)

    return kernel


# ---------------------------------------------------------------------------
# Encoder forward (synthetic cnn_encoder stem + adaptive pool + permute).
# ---------------------------------------------------------------------------
def encoder_forward(images_nchw, params, *, encoded_image_size):
    N, Cin, H, W = images_nchw.shape
    cout = params["conv_w"].shape[0]
    E = encoded_image_size
    P = 3

    Ho = (H + 2 * P - 7) // 2 + 1
    Wo = (W + 2 * P - 7) // 2 + 1
    Hp = (Ho - 1) // 2 + 1               # MaxPool2d(3, 2, 1) output sizes
    Wp = (Wo - 1) // 2 + 1
    Cs2d = 4 * Cin                       # 2x2 space-to-depth channels (12)
    Cpack = 4 * Cs2d                     # + 4 packed column taps -> K=48

    # ---- input prep (pure layout transforms on the XLA side) --------------
    x = jnp.transpose(images_nchw, (0, 2, 3, 1)).astype(jnp.float32)   # NHWC
    x = jnp.pad(x, ((0, 0), (P, P), (P, P), (0, 0)))                   # conv pad
    Hpad, Wpad = H + 2 * P, W + 2 * P
    eh, ew = Hpad % 2, Wpad % 2
    if eh or ew:
        x = jnp.pad(x, ((0, 0), (0, eh), (0, ew), (0, 0)))
    H2, W2 = (Hpad + eh) // 2, (Wpad + ew) // 2                        # = Ho+3, Wo+3
    x = x.reshape(N, H2, 2, W2, 2, Cin).transpose(0, 1, 3, 2, 4, 5)
    x = x.reshape(N, H2, W2, Cs2d)                                     # (dy,dx,ci)
    # Pack the 4 column taps into channels: K per MXU dot becomes 48.
    xw = jnp.pad(x, ((0, 0), (0, 0), (0, 3), (0, 0)))
    x = jnp.concatenate([xw[:, :, m:m + W2, :] for m in range(4)], axis=-1)
    # Pad W to a multiple of 16 (bf16 sublane tile) and flatten (H2, W2p).
    W2p = _round_up(W2, 16)
    x = jnp.pad(x, ((0, 0), (0, 0), (0, W2p - W2), (0, 0)))
    x_flat = x.reshape(N, H2 * W2p, Cpack).astype(jnp.bfloat16)

    # ---- weights: fold BN scale into conv, embed 7x7 -> 8x8, pack taps ----
    eps = 1e-5
    scale = params["bn_gamma"] / jnp.sqrt(params["bn_var"] + eps)       # (Cout,)
    shift = (params["bn_beta"] - params["bn_mean"] * scale)
    shift = shift.reshape(1, cout).astype(jnp.float32)
    w = params["conv_w"] * scale[:, None, None, None]                   # (co,ci,7,7)
    w8 = jnp.pad(w, ((0, 0), (0, 0), (0, 1), (0, 1)))                   # (co,ci,8,8)
    w2 = w8.reshape(cout, Cin, 4, 2, 4, 2).transpose(2, 4, 3, 5, 1, 0)  # (p,m,dy,dx,ci,co)
    w_pack = w2.reshape(4, Cpack, cout).astype(jnp.bfloat16)            # (p, 48, co)

    # ---- adaptive-average binning matrices (column / row) -----------------
    cs, ce = _adaptive_bins(Wp, E)
    pw_np = np.zeros((E, W2p), np.float32)
    for f in range(E):
        width = ce[f] - cs[f]
        for s in range(cs[f], ce[f]):
            pw_np[f, 2 * s] = 1.0 / width           # maxpool-centre columns
    pw_mat = jnp.asarray(pw_np)

    rs, re = _adaptive_bins(Hp, E)
    rw_np = np.zeros((E, Hp), np.float32)
    for e in range(E):
        rw_np[e, rs[e]:re[e]] = 1.0 / (re[e] - rs[e])
    rw_mat = jnp.asarray(rw_np)

    R = min(8, Ho)
    kernel = _make_fused_kernel(Ho=Ho, Wo=Wo, W2p=W2p, Hp=Hp, E=E, R=R)
    out_t = pl.pallas_call(
        kernel,
        out_shape=jax.ShapeDtypeStruct((N, E, E, cout), jnp.float32),
        grid=(N,),
        in_specs=[
            pl.BlockSpec((None, H2 * W2p, Cpack), lambda n: (n, 0, 0)),
            pl.BlockSpec((4, Cpack, cout), lambda n: (0, 0, 0)),
            pl.BlockSpec((1, cout), lambda n: (0, 0)),
            pl.BlockSpec((E, W2p), lambda n: (0, 0)),
            pl.BlockSpec((E, Hp), lambda n: (0, 0)),
        ],
        out_specs=pl.BlockSpec((None, E, E, cout), lambda n: (n, 0, 0, 0)),
        scratch_shapes=[
            pltpu.VMEM((Ho * W2p, cout), jnp.float32),   # conv activations
            pltpu.VMEM((Hp, E, cout), jnp.float32),      # per-row col-binned
        ],
        compiler_params=pltpu.CompilerParams(
            dimension_semantics=("parallel",),
            vmem_limit_bytes=48 * 1024 * 1024),
    )(x_flat, w_pack, shift, pw_mat, rw_mat)

    # Kernel writes (N, E_w, E_h, C); swap to (N, E_h, E_w, C).  The reference
    # permute(0, 2, 3, 1) is then the identity in this NHWC layout.
    return jnp.transpose(out_t, (0, 2, 1, 3))


# ---------------------------------------------------------------------------
# Pure-JAX (XLA) reference with the same bf16 rounding of conv inputs/weights.
# ---------------------------------------------------------------------------
def encoder_reference(images_nchw, params, *, encoded_image_size):
    E = encoded_image_size
    eps = 1e-5
    scale = params["bn_gamma"] / jnp.sqrt(params["bn_var"] + eps)
    shift = params["bn_beta"] - params["bn_mean"] * scale

    x = jnp.transpose(images_nchw, (0, 2, 3, 1)).astype(jnp.float32)
    x = x.astype(jnp.bfloat16).astype(jnp.float32)
    w = (params["conv_w"] * scale[:, None, None, None]).astype(jnp.bfloat16)
    w = jnp.transpose(w.astype(jnp.float32), (2, 3, 1, 0))      # (7,7,Cin,Cout)
    y = jax.lax.conv_general_dilated(
        x, w, window_strides=(2, 2), padding=((3, 3), (3, 3)),
        dimension_numbers=("NHWC", "HWIO", "NHWC"),
        precision=jax.lax.Precision.HIGHEST)
    y = jnp.maximum(y + shift[None, None, None, :], 0.0)
    z = jax.lax.reduce_window(
        y, -jnp.inf, jax.lax.max,
        window_dimensions=(1, 3, 3, 1), window_strides=(1, 2, 2, 1),
        padding=((0, 0), (1, 1), (1, 1), (0, 0)))
    Hp, Wp = z.shape[1], z.shape[2]
    rs, re = _adaptive_bins(Hp, E)
    cs, ce = _adaptive_bins(Wp, E)
    rows = []
    for e in range(E):
        cols = []
        for f in range(E):
            blk = z[:, rs[e]:re[e], cs[f]:ce[f], :]
            cols.append(jnp.mean(blk, axis=(1, 2)))
        rows.append(jnp.stack(cols, axis=1))
    return jnp.stack(rows, axis=1)                               # (N, E, E, C)


def init_params(key, cin=3, cout=64, kh=7, kw=7):
    k1, k2, k3, k4, k5 = jax.random.split(key, 5)
    return {
        "conv_w": 0.05 * jax.random.normal(k1, (cout, cin, kh, kw), jnp.float32),
        "bn_gamma": 1.0 + 0.1 * jax.random.normal(k2, (cout,), jnp.float32),
        "bn_beta": 0.1 * jax.random.normal(k3, (cout,), jnp.float32),
        "bn_mean": 0.1 * jax.random.normal(k4, (cout,), jnp.float32),
        "bn_var": 1.0 + jnp.abs(0.1 * jax.random.normal(k5, (cout,), jnp.float32)),
    }


if __name__ == "__main__":
    key = jax.random.PRNGKey(0)
    pkey, xkey = jax.random.split(key)

    params = init_params(pkey)
    # Small image consistent with (batch, 3, image_size, image_size).
    images = jax.random.normal(xkey, (2, 3, 32, 32), jnp.float32)

    ENCODED_IMAGE_SIZE = 4  # small analogue of the default 14

    fwd = jax.jit(functools.partial(encoder_forward,
                                    encoded_image_size=ENCODED_IMAGE_SIZE))
    out = jax.block_until_ready(fwd(images, params))

    assert out.shape == (2, ENCODED_IMAGE_SIZE, ENCODED_IMAGE_SIZE, 64), out.shape
    assert out.dtype == jnp.float32
    assert bool(jnp.all(jnp.isfinite(out)))

    ref = jax.block_until_ready(
        encoder_reference(images, params,
                          encoded_image_size=ENCODED_IMAGE_SIZE))
    np.testing.assert_allclose(np.asarray(out), np.asarray(ref),
                               rtol=1e-2, atol=1e-2)
    print("KERNEL_OK")
</pallas_src>

<mosaic_0001>
module attributes {stable_mosaic.version = 11 : i64} {
  func.func @kernel(%arg0: i32, %arg1: memref<1x608x48xbf16, #tpu.memory_space<vmem>>, %arg2: memref<4x48x64xbf16, #tpu.memory_space<vmem>>, %arg3: memref<1x64xf32, #tpu.memory_space<vmem>>, %arg4: memref<4x32xf32, #tpu.memory_space<vmem>>, %arg5: memref<4x8xf32, #tpu.memory_space<vmem>>, %arg6: memref<1x4x4x64xf32, #tpu.memory_space<vmem>>, %arg7: memref<512x64xf32, #tpu.memory_space<vmem>>, %arg8: memref<8x4x64xf32, #tpu.memory_space<vmem>>) attributes {dimension_semantics = [#tpu.dimension_semantics<parallel>], iteration_bounds = array<i64: 2>, scalar_prefetch = 0 : i64, scratch_operands = 2 : i64, tpu.core_type = #tpu.core_type<tc>, window_params = [{transform_indices = @transform_0, window_bounds = array<i64: 1, 608, 48>}, {pipeline_mode = #tpu.pipeline_mode<synchronous>, transform_indices = @transform_1, window_bounds = array<i64: 4, 48, 64>}, {pipeline_mode = #tpu.pipeline_mode<synchronous>, transform_indices = @transform_2, window_bounds = array<i64: 1, 64>}, {pipeline_mode = #tpu.pipeline_mode<synchronous>, transform_indices = @transform_3, window_bounds = array<i64: 4, 32>}, {pipeline_mode = #tpu.pipeline_mode<synchronous>, transform_indices = @transform_4, window_bounds = array<i64: 4, 8>}, {transform_indices = @transform_5, window_bounds = array<i64: 1, 4, 4, 64>}]} {
    %c0 = arith.constant 0 : index
    %c0_0 = arith.constant 0 : index
    %0 = vector.load %arg3[%c0, %c0_0] : memref<1x64xf32, #tpu.memory_space<vmem>>, vector<1x64xf32>
    %c0_i32 = arith.constant 0 : i32
    %c8_i32 = arith.constant 8 : i32
    %1 = arith.muli %c0_i32, %c8_i32 : i32
    %c8_i32_1 = arith.constant 8 : i32
    %2 = arith.minsi %1, %c8_i32_1 : i32
    %c0_i32_2 = arith.constant 0 : i32
    %3 = arith.addi %2, %c0_i32_2 : i32
    %c32_i32 = arith.constant 32 : i32
    %4 = arith.muli %3, %c32_i32 : i32
    %5 = tpu.assume_multiple %4, 16 : i32
    %c0_3 = arith.constant 0 : index
    %6 = arith.index_cast %5 : i32 to index
    %c0_4 = arith.constant 0 : index
    %7 = vector.load %arg1[%c0_3, %6, %c0_4] : memref<1x608x48xbf16, #tpu.memory_space<vmem>>, vector<1x256x48xbf16>
    %8 = vector.shape_cast %7 : vector<1x256x48xbf16> to vector<256x48xbf16>
    %c0_5 = arith.constant 0 : index
    %c0_6 = arith.constant 0 : index
    %c0_7 = arith.constant 0 : index
    %9 = vector.load %arg2[%c0_5, %c0_6, %c0_7] : memref<4x48x64xbf16, #tpu.memory_space<vmem>>, vector<1x48x64xbf16>
    %10 = vector.shape_cast %9 : vector<1x48x64xbf16> to vector<48x64xbf16>
    %cst = arith.constant dense<0.000000e+00> : vector<256x64xf32>
    %11 = tpu.matmul %8, %10, %cst {dimension_numbers = #tpu.dot_dimension_numbers<[1], [0], [0], [1], [0, 0, 1, 1], [], []>} : vector<256x48xbf16>, vector<48x64xbf16>, vector<256x64xf32> -> vector<256x64xf32>
    %c1_i32 = arith.constant 1 : i32
    %12 = arith.addi %2, %c1_i32 : i32
    %c32_i32_8 = arith.constant 32 : i32
    %13 = arith.muli %12, %c32_i32_8 : i32
    %14 = tpu.assume_multiple %13, 16 : i32
    %c0_9 = arith.constant 0 : index
    %15 = arith.index_cast %14 : i32 to index
    %c0_10 = arith.constant 0 : index
    %16 = vector.load %arg1[%c0_9, %15, %c0_10] : memref<1x608x48xbf16, #tpu.memory_space<vmem>>, vector<1x256x48xbf16>
    %17 = vector.shape_cast %16 : vector<1x256x48xbf16> to vector<256x48xbf16>
    %c1 = arith.constant 1 : index
    %c0_11 = arith.constant 0 : index
    %c0_12 = arith.constant 0 : index
    %18 = vector.load %arg2[%c1, %c0_11, %c0_12] : memref<4x48x64xbf16, #tpu.memory_space<vmem>>, vector<1x48x64xbf16>
    %19 = vector.shape_cast %18 : vector<1x48x64xbf16> to vector<48x64xbf16>
    %cst_13 = arith.constant dense<0.000000e+00> : vector<256x64xf32>
    %20 = tpu.matmul %17, %19, %cst_13 {dimension_numbers = #tpu.dot_dimension_numbers<[1], [0], [0], [1], [0, 0, 1, 1], [], []>} : vector<256x48xbf16>, vector<48x64xbf16>, vector<256x64xf32> -> vector<256x64xf32>
    %21 = arith.addf %11, %20 : vector<256x64xf32>
    %c2_i32 = arith.constant 2 : i32
    %22 = arith.addi %2, %c2_i32 : i32
    %c32_i32_14 = arith.constant 32 : i32
    %23 = arith.muli %22, %c32_i32_14 : i32
    %24 = tpu.assume_multiple %23, 16 : i32
    %c0_15 = arith.constant 0 : index
    %25 = arith.index_cast %24 : i32 to index
    %c0_16 = arith.constant 0 : index
    %26 = vector.load %arg1[%c0_15, %25, %c0_16] : memref<1x608x48xbf16, #tpu.memory_space<vmem>>, vector<1x256x48xbf16>
    %27 = vector.shape_cast %26 : vector<1x256x48xbf16> to vector<256x48xbf16>
    %c2 = arith.constant 2 : index
    %c0_17 = arith.constant 0 : index
    %c0_18 = arith.constant 0 : index
    %28 = vector.load %arg2[%c2, %c0_17, %c0_18] : memref<4x48x64xbf16, #tpu.memory_space<vmem>>, vector<1x48x64xbf16>
    %29 = vector.shape_cast %28 : vector<1x48x64xbf16> to vector<48x64xbf16>
    %cst_19 = arith.constant dense<0.000000e+00> : vector<256x64xf32>
    %30 = tpu.matmul %27, %29, %cst_19 {dimension_numbers = #tpu.dot_dimension_numbers<[1], [0], [0], [1], [0, 0, 1, 1], [], []>} : vector<256x48xbf16>, vector<48x64xbf16>, vector<256x64xf32> -> vector<256x64xf32>
    %31 = arith.addf %21, %30 : vector<256x64xf32>
    %c3_i32 = arith.constant 3 : i32
    %32 = arith.addi %2, %c3_i32 : i32
    %c32_i32_20 = arith.constant 32 : i32
    %33 = arith.muli %32, %c32_i32_20 : i32
    %34 = tpu.assume_multiple %33, 16 : i32
    %c0_21 = arith.constant 0 : index
    %35 = arith.index_cast %34 : i32 to index
    %c0_22 = arith.constant 0 : index
    %36 = vector.load %arg1[%c0_21, %35, %c0_22] : memref<1x608x48xbf16, #tpu.memory_space<vmem>>, vector<1x256x48xbf16>
    %37 = vector.shape_cast %36 : vector<1x256x48xbf16> to vector<256x48xbf16>
    %c3 = arith.constant 3 : index
    %c0_23 = arith.constant 0 : index
    %c0_24 = arith.constant 0 : index
    %38 = vector.load %arg2[%c3, %c0_23, %c0_24] : memref<4x48x64xbf16, #tpu.memory_space<vmem>>, vector<1x48x64xbf16>
    %39 = vector.shape_cast %38 : vector<1x48x64xbf16> to vector<48x64xbf16>
    %cst_25 = arith.constant dense<0.000000e+00> : vector<256x64xf32>
    %40 = tpu.matmul %37, %39, %cst_25 {dimension_numbers = #tpu.dot_dimension_numbers<[1], [0], [0], [1], [0, 0, 1, 1], [], []>} : vector<256x48xbf16>, vector<48x64xbf16>, vector<256x64xf32> -> vector<256x64xf32>
    %41 = arith.addf %31, %40 : vector<256x64xf32>
    %c32_i32_26 = arith.constant 32 : i32
    %42 = arith.muli %2, %c32_i32_26 : i32
    %43 = tpu.assume_multiple %42, 16 : i32
    %44 = vector.broadcast %0 : vector<1x64xf32> to vector<256x64xf32>
    %45 = arith.addf %41, %44 : vector<256x64xf32>
    %cst_27 = arith.constant 0.000000e+00 : f32
    %46 = vector.broadcast %cst_27 : f32 to vector<256x64xf32>
    %47 = arith.maximumf %45, %46 : vector<256x64xf32>
    %48 = arith.index_cast %43 : i32 to index
    %c0_28 = arith.constant 0 : index
    %49 = vector.load %arg7[%48, %c0_28] : memref<512x64xf32, #tpu.memory_space<vmem>>, vector<256x64xf32>
    tpu.vector_store %arg7[%48, %c0_28], %47 {strides = array<i32>} : memref<512x64xf32, #tpu.memory_space<vmem>>, vector<256x64xf32>,
    %c1_i32_29 = arith.constant 1 : i32
    %c8_i32_30 = arith.constant 8 : i32
    %50 = arith.muli %c1_i32_29, %c8_i32_30 : i32
    %c8_i32_31 = arith.constant 8 : i32
    %51 = arith.minsi %50, %c8_i32_31 : i32
    %c0_i32_32 = arith.constant 0 : i32
    %52 = arith.addi %51, %c0_i32_32 : i32
    %c32_i32_33 = arith.constant 32 : i32
    %53 = arith.muli %52, %c32_i32_33 : i32
    %54 = tpu.assume_multiple %53, 16 : i32
    %c0_34 = arith.constant 0 : index
    %55 = arith.index_cast %54 : i32 to index
    %c0_35 = arith.constant 0 : index
    %56 = vector.load %arg1[%c0_34, %55, %c0_35] : memref<1x608x48xbf16, #tpu.memory_space<vmem>>, vector<1x256x48xbf16>
    %57 = vector.shape_cast %56 : vector<1x256x48xbf16> to vector<256x48xbf16>
    %c0_36 = arith.constant 0 : index
    %c0_37 = arith.constant 0 : index
    %c0_38 = arith.constant 0 : index
    %58 = vector.load %arg2[%c0_36, %c0_37, %c0_38] : memref<4x48x64xbf16, #tpu.memory_space<vmem>>, vector<1x48x64xbf16>
    %59 = vector.shape_cast %58 : vector<1x48x64xbf16> to vector<48x64xbf16>
    %cst_39 = arith.constant dense<0.000000e+00> : vector<256x64xf32>
    %60 = tpu.matmul %57, %59, %cst_39 {dimension_numbers = #tpu.dot_dimension_numbers<[1], [0], [0], [1], [0, 0, 1, 1], [], []>} : vector<256x48xbf16>, vector<48x64xbf16>, vector<256x64xf32> -> vector<256x64xf32>
    %c1_i32_40 = arith.constant 1 : i32
    %61 = arith.addi %51, %c1_i32_40 : i32
    %c32_i32_41 = arith.constant 32 : i32
    %62 = arith.muli %61, %c32_i32_41 : i32
    %63 = tpu.assume_multiple %62, 16 : i32
    %c0_42 = arith.constant 0 : index
    %64 = arith.index_cast %63 : i32 to index
    %c0_43 = arith.constant 0 : index
    %65 = vector.load %arg1[%c0_42, %64, %c0_43] : memref<1x608x48xbf16, #tpu.memory_space<vmem>>, vector<1x256x48xbf16>
    %66 = vector.shape_cast %65 : vector<1x256x48xbf16> to vector<256x48xbf16>
    %c1_44 = arith.constant 1 : index
    %c0_45 = arith.constant 0 : index
    %c0_46 = arith.constant 0 : index
    %67 = vector.load %arg2[%c1_44, %c0_45, %c0_46] : memref<4x48x64xbf16, #tpu.memory_space<vmem>>, vector<1x48x64xbf16>
    %68 = vector.shape_cast %67 : vector<1x48x64xbf16> to vector<48x64xbf16>
    %cst_47 = arith.constant dense<0.000000e+00> : vector<256x64xf32>
    %69 = tpu.matmul %66, %68, %cst_47 {dimension_numbers = #tpu.dot_dimension_numbers<[1], [0], [0], [1], [0, 0, 1, 1], [], []>} : vector<256x48xbf16>, vector<48x64xbf16>, vector<256x64xf32> -> vector<256x64xf32>
    %70 = arith.addf %60, %69 : vector<256x64xf32>
    %c2_i32_48 = arith.constant 2 : i32
    %71 = arith.addi %51, %c2_i32_48 : i32
    %c32_i32_49 = arith.constant 32 : i32
    %72 = arith.muli %71, %c32_i32_49 : i32
    %73 = tpu.assume_multiple %72, 16 : i32
    %c0_50 = arith.constant 0 : index
    %74 = arith.index_cast %73 : i32 to index
    %c0_51 = arith.constant 0 : index
    %75 = vector.load %arg1[%c0_50, %74, %c0_51] : memref<1x608x48xbf16, #tpu.memory_space<vmem>>, vector<1x256x48xbf16>
    %76 = vector.shape_cast %75 : vector<1x256x48xbf16> to vector<256x48xbf16>
    %c2_52 = arith.constant 2 : index
    %c0_53 = arith.constant 0 : index
    %c0_54 = arith.constant 0 : index
    %77 = vector.load %arg2[%c2_52, %c0_53, %c0_54] : memref<4x48x64xbf16, #tpu.memory_space<vmem>>, vector<1x48x64xbf16>
    %78 = vector.shape_cast %77 : vector<1x48x64xbf16> to vector<48x64xbf16>
    %cst_55 = arith.constant dense<0.000000e+00> : vector<256x64xf32>
    %79 = tpu.matmul %76, %78, %cst_55 {dimension_numbers = #tpu.dot_dimension_numbers<[1], [0], [0], [1], [0, 0, 1, 1], [], []>} : vector<256x48xbf16>, vector<48x64xbf16>, vector<256x64xf32> -> vector<256x64xf32>
    %80 = arith.addf %70, %79 : vector<256x64xf32>
    %c3_i32_56 = arith.constant 3 : i32
    %81 = arith.addi %51, %c3_i32_56 : i32
    %c32_i32_57 = arith.constant 32 : i32
    %82 = arith.muli %81, %c32_i32_57 : i32
    %83 = tpu.assume_multiple %82, 16 : i32
    %c0_58 = arith.constant 0 : index
    %84 = arith.index_cast %83 : i32 to index
    %c0_59 = arith.constant 0 : index
    %85 = vector.load %arg1[%c0_58, %84, %c0_59] : memref<1x608x48xbf16, #tpu.memory_space<vmem>>, vector<1x256x48xbf16>
    %86 = vector.shape_cast %85 : vector<1x256x48xbf16> to vector<256x48xbf16>
    %c3_60 = arith.constant 3 : index
    %c0_61 = arith.constant 0 : index
    %c0_62 = arith.constant 0 : index
    %87 = vector.load %arg2[%c3_60, %c0_61, %c0_62] : memref<4x48x64xbf16, #tpu.memory_space<vmem>>, vector<1x48x64xbf16>
    %88 = vector.shape_cast %87 : vector<1x48x64xbf16> to vector<48x64xbf16>
    %cst_63 = arith.constant dense<0.000000e+00> : vector<256x64xf32>
    %89 = tpu.matmul %86, %88, %cst_63 {dimension_numbers = #tpu.dot_dimension_numbers<[1], [0], [0], [1], [0, 0, 1, 1], [], []>} : vector<256x48xbf16>, vector<48x64xbf16>, vector<256x64xf32> -> vector<256x64xf32>
    %90 = arith.addf %80, %89 : vector<256x64xf32>
    %c32_i32_64 = arith.constant 32 : i32
    %91 = arith.muli %51, %c32_i32_64 : i32
    %92 = tpu.assume_multiple %91, 16 : i32
    %93 = vector.broadcast %0 : vector<1x64xf32> to vector<256x64xf32>
    %94 = arith.addf %90, %93 : vector<256x64xf32>
    %cst_65 = arith.constant 0.000000e+00 : f32
    %95 = vector.broadcast %cst_65 : f32 to vector<256x64xf32>
    %96 = arith.maximumf %94, %95 : vector<256x64xf32>
    %97 = arith.index_cast %92 : i32 to index
    %c0_66 = arith.constant 0 : index
    %98 = vector.load %arg7[%97, %c0_66] : memref<512x64xf32, #tpu.memory_space<vmem>>, vector<256x64xf32>
    tpu.vector_store %arg7[%97, %c0_66], %96 {strides = array<i32>} : memref<512x64xf32, #tpu.memory_space<vmem>>, vector<256x64xf32>,
    %c2_i32_67 = arith.constant 2 : i32
    %c0_68 = arith.constant 0 : index
    %c0_69 = arith.constant 0 : index
    %99 = vector.load %arg4[%c0_68, %c0_69] : memref<4x32xf32, #tpu.memory_space<vmem>>, vector<4x32xf32>
    %100 = tpu.iota {dimensions = array<i32: 0>} : vector<32x64xi32>
    %c16_i32 = arith.constant 16 : i32
    %101 = vector.broadcast %c16_i32 : i32 to vector<32x64xi32>
    %102 = arith.cmpi slt, %100, %101 : vector<32x64xi32>
    %cst_70 = arith.constant 0.000000e+00 : f32
    %103 = vector.broadcast %cst_70 : f32 to vector<1x64xf32>
    %c0_i32_71 = arith.constant 0 : i32
    %c8_i32_72 = arith.constant 8 : i32
    %104 = arith.addi %c0_i32_71, %c8_i32_72 : i32
    %c1_i32_73 = arith.constant 1 : i32
    scf.for %arg9 = %c0_i32_71 to %104 step %c1_i32_73  : i32 {
      %c2_i32_109 = arith.constant 2 : i32
      %130 = arith.muli %c2_i32_109, %arg9 : i32
      %c1_i32_110 = arith.constant 1 : i32
      %131 = arith.subi %130, %c1_i32_110 : i32
      %c0_i32_111 = arith.constant 0 : i32
      %132 = arith.maxsi %131, %c0_i32_111 : i32
      %c1_i32_112 = arith.constant 1 : i32
      %133 = arith.addi %130, %c1_i32_112 : i32
      %c15_i32 = arith.constant 15 : i32
      %134 = arith.minsi %133, %c15_i32 : i32
      %c32_i32_113 = arith.constant 32 : i32
      %135 = arith.muli %130, %c32_i32_113 : i32
      %136 = tpu.assume_multiple %135, 16 : i32
      %137 = arith.index_cast %136 : i32 to index
      %c0_114 = arith.constant 0 : index
      %138 = vector.load %arg7[%137, %c0_114] : memref<512x64xf32, #tpu.memory_space<vmem>>, vector<32x64xf32>
      %c32_i32_115 = arith.constant 32 : i32
      %139 = arith.muli %132, %c32_i32_115 : i32
      %140 = tpu.assume_multiple %139, 16 : i32
      %141 = arith.index_cast %140 : i32 to index
      %c0_116 = arith.constant 0 : index
      %142 = vector.load %arg7[%141, %c0_116] : memref<512x64xf32, #tpu.memory_space<vmem>>, vector<32x64xf32>
      %c32_i32_117 = arith.constant 32 : i32
      %143 = arith.muli %134, %c32_i32_117 : i32
      %144 = tpu.assume_multiple %143, 16 : i32
      %145 = arith.index_cast %144 : i32 to index
      %c0_118 = arith.constant 0 : index
      %146 = vector.load %arg7[%145, %c0_118] : memref<512x64xf32, #tpu.memory_space<vmem>>, vector<32x64xf32>
      %147 = arith.maximumf %142, %146 : vector<32x64xf32>
      %148 = arith.maximumf %138, %147 : vector<32x64xf32>
      %cst_119 = arith.constant 0.000000e+00 : f32
      %149 = vector.broadcast %cst_119 : f32 to vector<32x64xf32>
      %150 = arith.select %102, %148, %149 : vector<32x64xi1>, vector<32x64xf32>
      %151 = vector.extract_strided_slice %150 {offsets = [0, 0], sizes = [31, 64], strides = [1, 1]} : vector<32x64xf32> to vector<31x64xf32>
      %152 = tpu.concatenate %103, %151 in 0 : vector<1x64xf32>, vector<31x64xf32> -> vector<32x64xf32>
      %153 = vector.extract_strided_slice %150 {offsets = [1, 0], sizes = [31, 64], strides = [1, 1]} : vector<32x64xf32> to vector<31x64xf32>
      %154 = tpu.concatenate %153, %103 in 0 : vector<31x64xf32>, vector<1x64xf32> -> vector<32x64xf32>
      %155 = arith.maximumf %152, %154 : vector<32x64xf32>
      %156 = arith.maximumf %150, %155 : vector<32x64xf32>
      %cst_120 = arith.constant dense<0.000000e+00> : vector<4x64xf32>
      %157 = tpu.matmul %99, %156, %cst_120 {dimension_numbers = #tpu.dot_dimension_numbers<[1], [0], [0], [1], [0, 0, 1, 1], [], []>} : vector<4x32xf32>, vector<32x64xf32>, vector<4x64xf32> -> vector<4x64xf32>
      %158 = arith.index_cast %arg9 : i32 to index
      %c0_121 = arith.constant 0 : index
      %c0_122 = arith.constant 0 : index
      %159 = vector.load %arg8[%158, %c0_121, %c0_122] : memref<8x4x64xf32, #tpu.memory_space<vmem>>, vector<1x4x64xf32>
      %160 = vector.shape_cast %159 : vector<1x4x64xf32> to vector<4x64xf32>
      %161 = vector.shape_cast %157 : vector<4x64xf32> to vector<1x4x64xf32>
      tpu.vector_store %arg8[%158, %c0_121, %c0_122], %161 {strides = array<i32>} : memref<8x4x64xf32, #tpu.memory_space<vmem>>, vector<1x4x64xf32>,
    }
    %c8_i32_74 = arith.constant 8 : i32
    %c0_75 = arith.constant 0 : index
    %c0_76 = arith.constant 0 : index
    %105 = vector.load %arg5[%c0_75, %c0_76] : memref<4x8xf32, #tpu.memory_space<vmem>>, vector<4x8xf32>
    %c0_77 = arith.constant 0 : index
    %c0_78 = arith.constant 0 : index
    %c0_79 = arith.constant 0 : index
    %106 = vector.load %arg8[%c0_77, %c0_78, %c0_79] : memref<8x4x64xf32, #tpu.memory_space<vmem>>, vector<8x1x64xf32>
    %107 = vector.shape_cast %106 : vector<8x1x64xf32> to vector<8x64xf32>
    %cst_80 = arith.constant dense<0.000000e+00> : vector<4x64xf32>
    %108 = tpu.matmul %105, %107, %cst_80 {dimension_numbers = #tpu.dot_dimension_numbers<[1], [0], [0], [1], [0, 0, 1, 1], [], []>} : vector<4x8xf32>, vector<8x64xf32>, vector<4x64xf32> -> vector<4x64xf32>
    %c0_81 = arith.constant 0 : index
    %c0_82 = arith.constant 0 : index
    %c0_83 = arith.constant 0 : index
    %c0_84 = arith.constant 0 : index
    %109 = vector.load %arg6[%c0_81, %c0_82, %c0_83, %c0_84] : memref<1x4x4x64xf32, #tpu.memory_space<vmem>>, vector<1x1x4x64xf32>
    %110 = vector.shape_cast %109 : vector<1x1x4x64xf32> to vector<4x64xf32>
    %111 = vector.shape_cast %108 : vector<4x64xf32> to vector<1x1x4x64xf32>
    tpu.vector_store %arg6[%c0_81, %c0_82, %c0_83, %c0_84], %111 {strides = array<i32>} : memref<1x4x4x64xf32, #tpu.memory_space<vmem>>, vector<1x1x4x64xf32>,
    %c0_85 = arith.constant 0 : index
    %c1_86 = arith.constant 1 : index
    %c0_87 = arith.constant 0 : index
    %112 = vector.load %arg8[%c0_85, %c1_86, %c0_87] : memref<8x4x64xf32, #tpu.memory_space<vmem>>, vector<8x1x64xf32>
    %113 = vector.shape_cast %112 : vector<8x1x64xf32> to vector<8x64xf32>
    %cst_88 = arith.constant dense<0.000000e+00> : vector<4x64xf32>
    %114 = tpu.matmul %105, %113, %cst_88 {dimension_numbers = #tpu.dot_dimension_numbers<[1], [0], [0], [1], [0, 0, 1, 1], [], []>} : vector<4x8xf32>, vector<8x64xf32>, vector<4x64xf32> -> vector<4x64xf32>
    %c0_89 = arith.constant 0 : index
    %c1_90 = arith.constant 1 : index
    %c0_91 = arith.constant 0 : index
    %c0_92 = arith.constant 0 : index
    %115 = vector.load %arg6[%c0_89, %c1_90, %c0_91, %c0_92] : memref<1x4x4x64xf32, #tpu.memory_space<vmem>>, vector<1x1x4x64xf32>
    %116 = vector.shape_cast %115 : vector<1x1x4x64xf32> to vector<4x64xf32>
    %117 = vector.shape_cast %114 : vector<4x64xf32> to vector<1x1x4x64xf32>
    tpu.vector_store %arg6[%c0_89, %c1_90, %c0_91, %c0_92], %117 {strides = array<i32>} : memref<1x4x4x64xf32, #tpu.memory_space<vmem>>, vector<1x1x4x64xf32>,
    %c0_93 = arith.constant 0 : index
    %c2_94 = arith.constant 2 : index
    %c0_95 = arith.constant 0 : index
    %118 = vector.load %arg8[%c0_93, %c2_94, %c0_95] : memref<8x4x64xf32, #tpu.memory_space<vmem>>, vector<8x1x64xf32>
    %119 = vector.shape_cast %118 : vector<8x1x64xf32> to vector<8x64xf32>
    %cst_96 = arith.constant dense<0.000000e+00> : vector<4x64xf32>
    %120 = tpu.matmul %105, %119, %cst_96 {dimension_numbers = #tpu.dot_dimension_numbers<[1], [0], [0], [1], [0, 0, 1, 1], [], []>} : vector<4x8xf32>, vector<8x64xf32>, vector<4x64xf32> -> vector<4x64xf32>
    %c0_97 = arith.constant 0 : index
    %c2_98 = arith.constant 2 : index
    %c0_99 = arith.constant 0 : index
    %c0_100 = arith.constant 0 : index
    %121 = vector.load %arg6[%c0_97, %c2_98, %c0_99, %c0_100] : memref<1x4x4x64xf32, #tpu.memory_space<vmem>>, vector<1x1x4x64xf32>
    %122 = vector.shape_cast %121 : vector<1x1x4x64xf32> to vector<4x64xf32>
    %123 = vector.shape_cast %120 : vector<4x64xf32> to vector<1x1x4x64xf32>
    tpu.vector_store %arg6[%c0_97, %c2_98, %c0_99, %c0_100], %123 {strides = array<i32>} : memref<1x4x4x64xf32, #tpu.memory_space<vmem>>, vector<1x1x4x64xf32>,
    %c0_101 = arith.constant 0 : index
    %c3_102 = arith.constant 3 : index
    %c0_103 = arith.constant 0 : index
    %124 = vector.load %arg8[%c0_101, %c3_102, %c0_103] : memref<8x4x64xf32, #tpu.memory_space<vmem>>, vector<8x1x64xf32>
    %125 = vector.shape_cast %124 : vector<8x1x64xf32> to vector<8x64xf32>
    %cst_104 = arith.constant dense<0.000000e+00> : vector<4x64xf32>
    %126 = tpu.matmul %105, %125, %cst_104 {dimension_numbers = #tpu.dot_dimension_numbers<[1], [0], [0], [1], [0, 0, 1, 1], [], []>} : vector<4x8xf32>, vector<8x64xf32>, vector<4x64xf32> -> vector<4x64xf32>
    %c0_105 = arith.constant 0 : index
    %c3_106 = arith.constant 3 : index
    %c0_107 = arith.constant 0 : index
    %c0_108 = arith.constant 0 : index
    %127 = vector.load %arg6[%c0_105, %c3_106, %c0_107, %c0_108] : memref<1x4x4x64xf32, #tpu.memory_space<vmem>>, vector<1x1x4x64xf32>
    %128 = vector.shape_cast %127 : vector<1x1x4x64xf32> to vector<4x64xf32>
    %129 = vector.shape_cast %126 : vector<4x64xf32> to vector<1x1x4x64xf32>
    tpu.vector_store %arg6[%c0_105, %c3_106, %c0_107, %c0_108], %129 {strides = array<i32>} : memref<1x4x4x64xf32, #tpu.memory_space<vmem>>, vector<1x1x4x64xf32>,
    return
  }
  func.func @transform_0(%arg0: i32) -> (i32, i32, i32) {
    %c0_i32 = arith.constant 0 : i32
    %c0_i32_0 = arith.constant 0 : i32
    %c0_i32_1 = arith.constant 0 : i32
    return %arg0, %c0_i32, %c0_i32_0 : i32, i32, i32
  }
  func.func @transform_1(%arg0: i32) -> (i32, i32, i32) {
    %c0_i32 = arith.constant 0 : i32
    %c0_i32_0 = arith.constant 0 : i32
    %c0_i32_1 = arith.constant 0 : i32
    %c0_i32_2 = arith.constant 0 : i32
    return %c0_i32, %c0_i32_0, %c0_i32_1 : i32, i32, i32
  }
  func.func @transform_2(%arg0: i32) -> (i32, i32) {
    %c0_i32 = arith.constant 0 : i32
    %c0_i32_0 = arith.constant 0 : i32
    %c0_i32_1 = arith.constant 0 : i32
    return %c0_i32, %c0_i32_0 : i32, i32
  }
  func.func @transform_3(%arg0: i32) -> (i32, i32) {
    %c0_i32 = arith.constant 0 : i32
    %c0_i32_0 = arith.constant 0 : i32
    %c0_i32_1 = arith.constant 0 : i32
    return %c0_i32, %c0_i32_0 : i32, i32
  }
  func.func @transform_4(%arg0: i32) -> (i32, i32) {
    %c0_i32 = arith.constant 0 : i32
    %c0_i32_0 = arith.constant 0 : i32
    %c0_i32_1 = arith.constant 0 : i32
    return %c0_i32, %c0_i32_0 : i32, i32
  }
  func.func @transform_5(%arg0: i32) -> (i32, i32, i32, i32) {
    %c0_i32 = arith.constant 0 : i32
    %c0_i32_0 = arith.constant 0 : i32
    %c0_i32_1 = arith.constant 0 : i32
    %c0_i32_2 = arith.constant 0 : i32
    return %arg0, %c0_i32, %c0_i32_0, %c0_i32_1 : i32, i32, i32, i32
  }
}

</mosaic_0001>

<bundles_post_ra>
// kernel: encoder_forward.1
= control target key start
LH: loop header
LB: loop body
LE: loop exit
PB: predicated region body
PF: predicated region fallthrough
CT: control target
= control target key end

     0   :  { %s5476_s18 = smov 0   ;;  %s6041_s0 = inlined_call_operand.vmem [shape: bf16[2,608,48], index: 0, kind: input, shape index: {}]   ;;  %s6042_s1 = inlined_call_operand.vmem [shape: bf16[4,48,64], index: 1, kind: input, shape index: {}]   ;;  %s6043_s2 = inlined_call_operand.vmem [shape: f32[1,64], index: 2, kind: input, shape index: {}]   ;;  %s6044_s3 = inlined_call_operand.vmem [shape: f32[4,32], index: 3, kind: input, shape index: {}]   ;;  %s6045_s4 = inlined_call_operand.vmem [shape: f32[4,8], index: 4, kind: input, shape index: {}]   ;;  %s6046_s5 = inlined_call_operand.vmem [shape: f32[2,4,4,64], index: 5, kind: output, shape index: {}]  }
   0x1 LB: > { %s3987_s19 = sadd.s32 4294967295, %s5435_s18   ;;  %p3991_p0 = scmp.ge.s32.totalorder %s5435_s18, 1  ;;  %s5435_s18 = sphi %s5476_s18, %s15_s18  }
   0x2   : > { %p187_p1 = scmp.lt.s32.totalorder %s5435_s18, 3 }
   0x4   : > { %p188_p2 = pnand %p3991_p0, %p187_p1 }
   0x5   : > { %v5273_v0 = vld [vmem:[%s6042_s1 + $0x18] sm:$0xff] (!%p188_p2)   ;;  %p215_p3 = scmp.lt.s32.totalorder (!%p188_p2), %s3987_s19, 1  ;;  %v5275_v2 = vld [vmem:[%s6042_s1 + $0x20] sm:$0xff] (!%p188_p2)   ;;  %v5277_v4 = vld [vmem:[%s6042_s1 + $0x28] sm:$0xff] (!%p188_p2)   ;;  %vm403_vm0 = vcmask (!%p188_p2), 392192   ;;  %vm1748_vm1 = vcmask (!%p188_p2), 523264  }
   0x6   : > { %191 = sbr.rel (%p188_p2) target bundleno = 972 (0x3cc), region = 40  ;;  %v5274_v1 = vld [vmem:[%s6042_s1 + $0x18] sm:$0xff] (!%p188_p2)   ;;  %4718 = vmatprep.subr.bf16.mxu0 (!%p188_p2), %v5273_v0  ;;  %v5276_v3 = vld [vmem:[%s6042_s1 + $0x20] sm:$0xff] (!%p188_p2)   ;;  %v5278_v5 = vld [vmem:[%s6042_s1 + $0x28] sm:$0xff] (!%p188_p2)  }
   0x7   : > { %4870 = vmatprep.subr.bf16.mxu1 (!%p188_p2), %v5274_v1  ;;  %4719 = vmatpush3.bf16.msra.mxu0 (!%p188_p2), %v5273_v0  ;;  %v5282_v6 = vld [vmem:[%s6042_s1] sm:$0xff] (!%p188_p2)   ;;  %v5293_v18 = vld [vmem:[%s6042_s1 + $0x8] sm:$0xff] (!%p188_p2)   ;;  %v5307_v27 = vld [vmem:[%s6042_s1 + $0x10] sm:$0xff] (!%p188_p2)  }
   0x8   : > { %4871 = vmatpush3.bf16.msra.mxu1 (!%p188_p2), %v5274_v1  ;;  %4720 = vmatprep.subr.bf16.mxu0 (!%p188_p2), %v5275_v2  ;;  %v5284_v11 = vld [vmem:[%s6042_s1] sm:$0xff] (!%p188_p2)   ;;  %v5294_v19 = vld [vmem:[%s6042_s1 + $0x8] sm:$0xff] (!%p188_p2)   ;;  %v5308_v28 = vld [vmem:[%s6042_s1 + $0x10] sm:$0xff] (!%p188_p2)  }
   0x9   : > { %4872 = vmatprep.subr.bf16.mxu1 (!%p188_p2), %v5276_v3  ;;  %v5320_v34 = vld [vmem:[%s6042_s1 + $0x30] sm:$0xff] (!%p188_p2)   ;;  %v5331_v52 = vld [vmem:[%s6042_s1 + $0x38] sm:$0xff] (!%p188_p2)   ;;  %v5345_v55 = vld [vmem:[%s6042_s1 + $0x40] sm:$0xff] (!%p188_p2)  }
   0xa   : > { %v5322_v36 = vld [vmem:[%s6042_s1 + $0x30] sm:$0xff] (!%p188_p2)   ;;  %v5332_v53 = vld [vmem:[%s6042_s1 + $0x38] sm:$0xff] (!%p188_p2)   ;;  %v5346_v56 = vld [vmem:[%s6042_s1 + $0x40] sm:$0xff] (!%p188_p2)  }
   0xb   : > { %4721 = vmatpush3.bf16.msra.mxu0 (!%p188_p2), %v5275_v2  ;;  %v5631_v60 = vld [vmem:[%s6042_s1 + $0x48] sm:$0xff] (!%p188_p2)  }
   0xc   : > { %4873 = vmatpush3.bf16.msra.mxu1 (!%p188_p2), %v5276_v3  ;;  %4722 = vmatprep.subr.bf16.mxu0 (!%p188_p2), %v5277_v4  ;;  %v5360_v61 = vld [vmem:[%s6042_s1 + $0x48] sm:$0xff] (!%p188_p2)  }
   0xd   : > { %s6048_s19 = smov (!%p215_p3, %s3987_s19), 1  ;;  %4874 = vmatprep.subr.bf16.mxu1 %v5278_v5 }
   0xe   : > { %s5251_s30 = smul.u32 304, %s6048_s19  ;;  %s4552_s8 = sshll.u32 %s6048_s19, 4 }
   0xf   : > { %s5510_s14 = scalar_lea.vmem %s6046_s5, %s4552_s8  ;;  %4723 = vmatpush3.bf16.msra.mxu0 %v5277_v4 }
  0x10   : > { %s5505_s11 = scalar_lea.vmem %s6041_s0, %s5251_s30  ;;  %4875 = vmatpush3.bf16.msra.mxu1 %v5278_v5  ;;  %4756 = vmatprep.subr.bf16.mxu0 %v5282_v6 }
  0x11   : > { %v5279_v7 = vld [vmem:[%s5505_s11 + $0x10] sm:$0xff]   ;;  %v5281_v9 = vld [vmem:[%s5505_s11 + $0x18] sm:$0xff]   ;;  %v5285_v12 = vld [vmem:[%s5505_s11 + $0x20] sm:$0xff]   ;;  %4908 = vmatprep.subr.bf16.mxu1 %v5284_v11 }
  0x12   : > { %v5280_v8 = vld [vmem:[%s5505_s11 + $0x90] sm:$0xff]   ;;  %4724 = vmatprep.mubr.msk.bf16.mxu0 %vm403_vm0, %v5279_v7  ;;  %v5283_v10 = vld [vmem:[%s5505_s11 + $0x98] sm:$0xff]   ;;  %v5286_v13 = vld [vmem:[%s5505_s11 + $0xa0] sm:$0xff]  }
  0x13   : > { %4876 = vmatprep.mubr.msk.bf16.mxu1 %vm403_vm0, %v5280_v8  ;;  %4725 = vmatmul.mubr.msk.bf16.vlgmr.msra.gmra.mrb[0].mxu0 %vm403_vm0, %v5281_v9  ;;  %v5287_v14 = vld [vmem:[%s5505_s11 + $0x28] sm:$0xff]   ;;  %v5289_v16 = vld [vmem:[%s5505_s11 + $0x30] sm:$0xff]   ;;  %v5291_v20 = vld [vmem:[%s5505_s11 + $0x38] sm:$0xff]  }
  0x14   : > { %4877 = vmatmul.mubr.msk.bf16.vlgmr.msra.gmra.mrb[0].mxu1 %vm403_vm0, %v5283_v10  ;;  %4757 = vmatpush3.bf16.msra.mxu0 %v5282_v6  ;;  %v5288_v15 = vld [vmem:[%s5505_s11 + $0xa8] sm:$0xff]   ;;  %v5290_v17 = vld [vmem:[%s5505_s11 + $0xb0] sm:$0xff]   ;;  %v5292_v21 = vld [vmem:[%s5505_s11 + $0xb8] sm:$0xff]  }
  0x15   : > { %4909 = vmatpush3.bf16.msra.mxu1 %v5284_v11  ;;  %4728 = vmatprep.mubr.msk.bf16.mxu0 %vm403_vm0, %v5285_v12  ;;  %v5295_v22 = vld [vmem:[%s5505_s11 + $0x40] sm:$0xff]   ;;  %v5297_v24 = vld [vmem:[%s5505_s11 + $0x48] sm:$0xff]   ;;  %v5299_v26 = vld [vmem:[%s5505_s11 + $0x50] sm:$0xff]  }
  0x16   : > { %4880 = vmatprep.mubr.msk.bf16.mxu1 %vm403_vm0, %v5286_v13  ;;  %4758 = vmatprep.subr.bf16.mxu0 %v5293_v18  ;;  %v5296_v23 = vld [vmem:[%s5505_s11 + $0xc0] sm:$0xff]   ;;  %v5298_v25 = vld [vmem:[%s5505_s11 + $0xc8] sm:$0xff]   ;;  %v5300_v29 = vld [vmem:[%s5505_s11 + $0xd0] sm:$0xff]  }
  0x17   : > { %4910 = vmatprep.subr.bf16.mxu1 %v5294_v19  ;;  %v5301_v30 = vld [vmem:[%s5505_s11 + $0x58] sm:$0xff]   ;;  %v5303_v32 = vld [vmem:[%s5505_s11 + $0x60] sm:$0xff]   ;;  %v5305_v35 = vld [vmem:[%s5505_s11 + $0x68] sm:$0xff]  }
  0x18   : > { %4759 = vmatpush3.bf16.msra.mxu0 %v5293_v18  ;;  %v5302_v31 = vld [vmem:[%s5505_s11 + $0xd8] sm:$0xff]   ;;  %v5304_v33 = vld [vmem:[%s5505_s11 + $0xe0] sm:$0xff]   ;;  %v5306_v37 = vld [vmem:[%s5505_s11 + $0xe8] sm:$0xff]  }
  0x19   : > { %4911 = vmatpush3.bf16.msra.mxu1 %v5294_v19  ;;  %4760 = vmatprep.subr.bf16.mxu0 %v5307_v27  ;;  %v5309_v38 = vld [vmem:[%s5505_s11 + $0x70] sm:$0xff]   ;;  %v5311_v40 = vld [vmem:[%s5505_s11 + $0x78] sm:$0xff]   ;;  %v5313_v42 = vld [vmem:[%s5505_s11 + $0x80] sm:$0xff]  }
  0x1a   : > { %4912 = vmatprep.subr.bf16.mxu1 %v5308_v28  ;;  %v5310_v39 = vld [vmem:[%s5505_s11 + $0xf0] sm:$0xff]   ;;  %v5312_v41 = vld [vmem:[%s5505_s11 + $0xf8] sm:$0xff]   ;;  %v5314_v43 = vld [vmem:[%s5505_s11 + $0x100] sm:$0xff]  }
  0x1b   : > { %4729 = vmatmul.mubr.msk.bf16.gmra.mrb[4].mxu0 %vm403_vm0, %v5287_v14  ;;  %v5315_v44 = vld [vmem:[%s5505_s11 + $0x88] sm:$0xff]   ;;  %v5317_v46 = vld [vmem:[%s5505_s11] sm:$0xff]   ;;  %v5323_v50 = vld [vmem:[%s5505_s11 + $0x10] sm:$0xff]  }
  0x1c   : > { %4881 = vmatmul.mubr.msk.bf16.gmra.mrb[4].mxu1 %vm403_vm0, %v5288_v15  ;;  %4732 = vmatprep.mubr.msk.bf16.mxu0 %vm403_vm0, %v5289_v16  ;;  %v5316_v45 = vld [vmem:[%s5505_s11 + $0x108] sm:$0xff]   ;;  %v5318_v47 = vld [vmem:[%s5505_s11 + $0x80] sm:$0xff]   ;;  %v5324_v51 = vld [vmem:[%s5505_s11 + $0x90] sm:$0xff]  }
  0x1d   : > { %4884 = vmatprep.mubr.msk.bf16.mxu1 %vm403_vm0, %v5290_v17  ;;  %4761 = vmatpush3.bf16.msra.mxu0 %v5307_v27  ;;  %v5319_v48 = vld [vmem:[%s5505_s11 + $0x8] sm:$0xff]   ;;  %v5325_v54 = vld [vmem:[%s5505_s11 + $0x18] sm:$0xff]   ;;  %v5327_v58 = vld [vmem:[%s5505_s11 + $0x20] sm:$0xff]  }
  0x1e   : > { %4913 = vmatpush3.bf16.msra.mxu1 %v5308_v28  ;;  %4794 = vmatprep.subr.bf16.mxu0 %v5320_v34  ;;  %v5321_v49 = vld [vmem:[%s5505_s11 + $0x88] sm:$0xff]   ;;  %v5326_v57 = vld [vmem:[%s5505_s11 + $0x98] sm:$0xff]   ;;  %v5328_v59 = vld [vmem:[%s5505_s11 + $0xa0] sm:$0xff]  }
  0x1f   : > { %4946 = vmatprep.subr.bf16.mxu1 %v5322_v36  ;;  %v5329_v62 = vld [vmem:[%s5505_s11 + $0x28] sm:$0xff]   ;;  %v5333_v0 = vld [vmem:[%s5505_s11 + $0x30] sm:$0xff]   ;;  %v5335_v2 = vld [vmem:[%s5505_s11 + $0x38] sm:$0xff]  }
  0x20   : > { %v5330_v63 = vld [vmem:[%s5505_s11 + $0xa8] sm:$0xff]   ;;  %v5334_v1 = vld [vmem:[%s5505_s11 + $0xb0] sm:$0xff]   ;;  %v5336_v3 = vld [vmem:[%s5505_s11 + $0xb8] sm:$0xff]  }
  0x21   : > { %v5337_v4 = vld [vmem:[%s5505_s11 + $0x40] sm:$0xff]   ;;  %v5339_v6 = vld [vmem:[%s5505_s11 + $0x48] sm:$0xff]   ;;  %v5341_v8 = vld [vmem:[%s5505_s11 + $0x50] sm:$0xff]  }
  0x22   : > { %v5338_v5 = vld [vmem:[%s5505_s11 + $0xc0] sm:$0xff]   ;;  %v5340_v7 = vld [vmem:[%s5505_s11 + $0xc8] sm:$0xff]   ;;  %v5342_v9 = vld [vmem:[%s5505_s11 + $0xd0] sm:$0xff]  }
  0x23   : > { %4733 = vmatmul.mubr.msk.bf16.gmra.mrb[8].mxu0 %vm403_vm0, %v5291_v20  ;;  %v5343_v10 = vld [vmem:[%s5505_s11 + $0x58] sm:$0xff]   ;;  %v5347_v12 = vld [vmem:[%s5505_s11 + $0x60] sm:$0xff]   ;;  %v5349_v14 = vld [vmem:[%s5505_s11 + $0x68] sm:$0xff]  }
  0x24   : > { %4885 = vmatmul.mubr.msk.bf16.gmra.mrb[8].mxu1 %vm403_vm0, %v5292_v21  ;;  %4736 = vmatprep.mubr.msk.bf16.mxu0 %vm403_vm0, %v5295_v22  ;;  %v5344_v11 = vld [vmem:[%s5505_s11 + $0xd8] sm:$0xff]   ;;  %v5348_v13 = vld [vmem:[%s5505_s11 + $0xe0] sm:$0xff]   ;;  %v5350_v15 = vld [vmem:[%s5505_s11 + $0xe8] sm:$0xff]  }
  0x25   : > { %4888 = vmatprep.mubr.msk.bf16.mxu1 %vm403_vm0, %v5296_v23  ;;  %v5351_v16 = vld [vmem:[%s5505_s11 + $0x70] sm:$0xff]   ;;  %v5353_v18 = vld [vmem:[%s5505_s11 + $0x78] sm:$0xff]   ;;  %v5355_v20 = vld [vmem:[%s5505_s11 + $0x20] sm:$0xff]  }
  0x26   : > { %v5352_v17 = vld [vmem:[%s5505_s11 + $0xf0] sm:$0xff]   ;;  %v5354_v19 = vld [vmem:[%s5505_s11 + $0xf8] sm:$0xff]   ;;  %v5356_v21 = vld [vmem:[%s5505_s11 + $0xa0] sm:$0xff]  }
  0x27   : > { %v5357_v22 = vld [vmem:[%s5505_s11 + $0x28] sm:$0xff]   ;;  %v5370_v27 = vld [vmem:[%s6042_s1 + $0x50] sm:$0xff]   ;;  %v5363_v28 = vld [vmem:[%s5505_s11 + $0x38] sm:$0xff]  }
  0x28   : > { %v5359_v23 = vld [vmem:[%s5505_s11 + $0xa8] sm:$0xff]  }
  0x2b   : > { %4737 = vmatmul.mubr.msk.bf16.gmra.mrb[12].mxu0 %vm403_vm0, %v5297_v24  ;;  %v5361_v24 = vld [vmem:[%s5505_s11 + $0x30] sm:$0xff]  }
  0x2c   : > { %4889 = vmatmul.mubr.msk.bf16.gmra.mrb[12].mxu1 %vm403_vm0, %v5298_v25  ;;  %4740 = vmatprep.mubr.msk.bf16.mxu0 %vm403_vm0, %v5299_v26  ;;  %v5362_v25 = vld [vmem:[%s5505_s11 + $0xb0] sm:$0xff]  }
  0x2d   : > { %4892 = vmatprep.mubr.msk.bf16.mxu1 %vm403_vm0, %v5300_v29  ;;  %v5369_v26 = vld [vmem:[%s6042_s1 + $0x50] sm:$0xff]   ;;  %v5383_v29 = vld [vmem:[%s6042_s1 + $0x58] sm:$0xff]  }
  0x33   : > { %4741 = vmatmul.mubr.msk.bf16.gmra.mrb[16].mxu0 %vm403_vm0, %v5301_v30  ;;  %v5384_v30 = vld [vmem:[%s6042_s1 + $0x58] sm:$0xff]  }
  0x34   : > { %4893 = vmatmul.mubr.msk.bf16.gmra.mrb[16].mxu1 %vm403_vm0, %v5302_v31  ;;  %4744 = vmatprep.mubr.msk.bf16.mxu0 %vm403_vm0, %v5303_v32  ;;  %v5364_v31 = vld [vmem:[%s5505_s11 + $0xb8] sm:$0xff]   ;;  %v5365_v32 = vld [vmem:[%s5505_s11 + $0x40] sm:$0xff]  }
  0x35   : > { %4896 = vmatprep.mubr.msk.bf16.mxu1 %vm403_vm0, %v5304_v33  ;;  %v5366_v33 = vld [vmem:[%s5505_s11 + $0xc0] sm:$0xff]  }
  0x3b   : > { %4745 = vmatmul.mubr.msk.bf16.gmra.mrb[20].mxu0 %vm403_vm0, %v5305_v35  ;;  %v5368_v35 = vld [vmem:[%s5505_s11 + $0xc8] sm:$0xff]  }
  0x3c   : > { %4897 = vmatmul.mubr.msk.bf16.gmra.mrb[20].mxu1 %vm403_vm0, %v5306_v37  ;;  %4748 = vmatprep.mubr.msk.bf16.mxu0 %vm403_vm0, %v5309_v38  ;;  %v5372_v37 = vld [vmem:[%s5505_s11 + $0xd0] sm:$0xff]   ;;  %v5373_v38 = vld [vmem:[%s5505_s11 + $0x58] sm:$0xff]  }
  0x3d   : > { %4900 = vmatprep.mubr.msk.bf16.mxu1 %vm403_vm0, %v5310_v39  ;;  %v5374_v39 = vld [vmem:[%s5505_s11 + $0xd8] sm:$0xff]  }
  0x43   : > { %4749 = vmatmul.mubr.msk.bf16.gmra.mrb[24].mxu0 %vm403_vm0, %v5311_v40  ;;  %v5375_v40 = vld [vmem:[%s5505_s11 + $0x60] sm:$0xff]  }
  0x44   : > { %4901 = vmatmul.mubr.msk.bf16.gmra.mrb[24].mxu1 %vm403_vm0, %v5312_v41  ;;  %4752 = vmatprep.mubr.msk.bf16.mxu0 %vm403_vm0, %v5313_v42  ;;  %v5376_v41 = vld [vmem:[%s5505_s11 + $0xe0] sm:$0xff]   ;;  %v5377_v42 = vld [vmem:[%s5505_s11 + $0x68] sm:$0xff]  }
  0x45   : > { %4904 = vmatprep.mubr.msk.bf16.mxu1 %vm403_vm0, %v5314_v43  ;;  %v5378_v43 = vld [vmem:[%s5505_s11 + $0xe8] sm:$0xff]  }
  0x4b   : > { %4753 = vmatmul.mubr.msk.bf16.gmra.mrb[28].mxu0 %vm403_vm0, %v5315_v44  ;;  %v5379_v44 = vld [vmem:[%s5505_s11 + $0x70] sm:$0xff]  }
  0x4c   : > { %4905 = vmatmul.mubr.msk.bf16.gmra.mrb[28].mxu1 %vm403_vm0, %v5316_v45  ;;  %4762 = vmatprep.mubr.msk.bf16.mxu0 %vm403_vm0, %v5317_v46  ;;  %v5380_v45 = vld [vmem:[%s5505_s11 + $0xf0] sm:$0xff]   ;;  %v5381_v46 = vld [vmem:[%s5505_s11 + $0x78] sm:$0xff]  }
  0x4d   : > { %4914 = vmatprep.mubr.msk.bf16.mxu1 %vm403_vm0, %v5318_v47  ;;  %v5382_v47 = vld [vmem:[%s5505_s11 + $0xf8] sm:$0xff]  }
  0x53   : > { %4763 = vmatmul.mubr.msk.bf16.vlgmr.msra.gmra.mrb[0].mxu0 %vm403_vm0, %v5319_v48  ;;  %v5385_v48 = vld [vmem:[%s5505_s11 + $0x80] sm:$0xff]  }
  0x54   : > { %4915 = vmatmul.mubr.msk.bf16.vlgmr.msra.gmra.mrb[0].mxu1 %vm403_vm0, %v5321_v49  ;;  %4795 = vmatpush3.bf16.msra.mxu0 %v5320_v34  ;;  %v5367_v34 = vld [vmem:[%s5505_s11 + $0x48] sm:$0xff]   ;;  %v5386_v49 = vld [vmem:[%s5505_s11 + $0x100] sm:$0xff]  }
  0x55   : > { %4947 = vmatpush3.bf16.msra.mxu1 %v5322_v36  ;;  %4766 = vmatprep.mubr.msk.bf16.mxu0 %vm403_vm0, %v5323_v50  ;;  %v5371_v36 = vld [vmem:[%s5505_s11 + $0x50] sm:$0xff]   ;;  %v5387_v50 = vld [vmem:[%s5505_s11 + $0x88] sm:$0xff]  }
  0x56   : > { %4918 = vmatprep.mubr.msk.bf16.mxu1 %vm403_vm0, %v5324_v51  ;;  %4796 = vmatprep.subr.bf16.mxu0 %v5331_v52  ;;  %v5388_v51 = vld [vmem:[%s5505_s11 + $0x108] sm:$0xff]  }
  0x57   : > { %4948 = vmatprep.subr.bf16.mxu1 %v5332_v53 }
  0x58   : > { %4797 = vmatpush3.bf16.msra.mxu0 %v5331_v52  ;;  %v5389_v52 = vld [vmem:[%s5505_s11 + $0x90] sm:$0xff]  }
  0x59   : > { %4949 = vmatpush3.bf16.msra.mxu1 %v5332_v53  ;;  %4798 = vmatprep.subr.bf16.mxu0 %v5345_v55  ;;  %v5390_v53 = vld [vmem:[%s5505_s11 + $0x110] sm:$0xff]  }
  0x5a   : > { %4950 = vmatprep.subr.bf16.mxu1 %v5346_v56 }
  0x5b   : > { %4767 = vmatmul.mubr.msk.bf16.gmra.mrb[4].mxu0 %vm403_vm0, %v5325_v54  ;;  %v5391_v54 = vld [vmem:[%s5505_s11 + $0x98] sm:$0xff]  }
  0x5c   : > { %4919 = vmatmul.mubr.msk.bf16.gmra.mrb[4].mxu1 %vm403_vm0, %v5326_v57  ;;  %4770 = vmatprep.mubr.msk.bf16.mxu0 %vm403_vm0, %v5327_v58  ;;  %v5394_v57 = vld [vmem:[%s5505_s11 + $0xb0] sm:$0xff]   ;;  %v5395_v58 = vld [vmem:[%s5505_s11 + $0x38] sm:$0xff]  }
  0x5d   : > { %4922 = vmatprep.mubr.msk.bf16.mxu1 %vm403_vm0, %v5328_v59  ;;  %4799 = vmatpush3.bf16.msra.mxu0 %v5345_v55  ;;  %v5392_v55 = vld [vmem:[%s5505_s11 + $0x118] sm:$0xff]  }
  0x5e   : > { %4951 = vmatpush3.bf16.msra.mxu1 %v5346_v56  ;;  %4832 = vmatprep.subr.bf16.mxu0 %v5631_v60  ;;  %v5393_v56 = vld [vmem:[%s5505_s11 + $0x30] sm:$0xff]   ;;  %v5396_v59 = vld [vmem:[%s5505_s11 + $0xb8] sm:$0xff]  }
  0x5f   : > { %4984 = vmatprep.subr.bf16.mxu1 %v5360_v61 }
  0x63   : > { %4771 = vmatmul.mubr.msk.bf16.gmra.mrb[8].mxu0 %vm403_vm0, %v5329_v62  ;;  %v5399_v62 = vld [vmem:[%s5505_s11 + $0x48] sm:$0xff]  }
  0x64   : > { %4923 = vmatmul.mubr.msk.bf16.gmra.mrb[8].mxu1 %vm403_vm0, %v5330_v63  ;;  %4774 = vmatprep.mubr.msk.bf16.mxu0 %vm403_vm0, %v5333_v0  ;;  %v5400_v63 = vld [vmem:[%s5505_s11 + $0xc8] sm:$0xff]   ;;  %v5401_v0 = vld [vmem:[%s5505_s11 + $0x50] sm:$0xff]  }
  0x65   : > { %4926 = vmatprep.mubr.msk.bf16.mxu1 %vm403_vm0, %v5334_v1  ;;  %v5402_v1 = vld [vmem:[%s5505_s11 + $0xd0] sm:$0xff]  }
  0x6b   : > { %4775 = vmatmul.mubr.msk.bf16.gmra.mrb[12].mxu0 %vm403_vm0, %v5335_v2  ;;  %v5403_v2 = vld [vmem:[%s5505_s11 + $0x58] sm:$0xff]  }
  0x6c   : > { %4927 = vmatmul.mubr.msk.bf16.gmra.mrb[12].mxu1 %vm403_vm0, %v5336_v3  ;;  %4778 = vmatprep.mubr.msk.bf16.mxu0 %vm403_vm0, %v5337_v4  ;;  %v5404_v3 = vld [vmem:[%s5505_s11 + $0xd8] sm:$0xff]   ;;  %v5405_v4 = vld [vmem:[%s5505_s11 + $0x60] sm:$0xff]  }
  0x6d   : > { %4930 = vmatprep.mubr.msk.bf16.mxu1 %vm403_vm0, %v5338_v5  ;;  %v5406_v5 = vld [vmem:[%s5505_s11 + $0xe0] sm:$0xff]  }
  0x73   : > { %4779 = vmatmul.mubr.msk.bf16.gmra.mrb[16].mxu0 %vm403_vm0, %v5339_v6  ;;  %v5407_v6 = vld [vmem:[%s5505_s11 + $0x68] sm:$0xff]  }
  0x74   : > { %4931 = vmatmul.mubr.msk.bf16.gmra.mrb[16].mxu1 %vm403_vm0, %v5340_v7  ;;  %4782 = vmatprep.mubr.msk.bf16.mxu0 %vm403_vm0, %v5341_v8  ;;  %v5408_v7 = vld [vmem:[%s5505_s11 + $0xe8] sm:$0xff]   ;;  %v5409_v8 = vld [vmem:[%s5505_s11 + $0x70] sm:$0xff]  }
  0x75   : > { %4934 = vmatprep.mubr.msk.bf16.mxu1 %vm403_vm0, %v5342_v9  ;;  %v5410_v9 = vld [vmem:[%s5505_s11 + $0xf0] sm:$0xff]  }
  0x7b   : > { %4783 = vmatmul.mubr.msk.bf16.gmra.mrb[20].mxu0 %vm403_vm0, %v5343_v10  ;;  %v5411_v10 = vld [vmem:[%s5505_s11 + $0x78] sm:$0xff]  }
  0x7c   : > { %4935 = vmatmul.mubr.msk.bf16.gmra.mrb[20].mxu1 %vm403_vm0, %v5344_v11  ;;  %4786 = vmatprep.mubr.msk.bf16.mxu0 %vm403_vm0, %v5347_v12  ;;  %v5412_v11 = vld [vmem:[%s5505_s11 + $0xf8] sm:$0xff]   ;;  %v5413_v12 = vld [vmem:[%s5505_s11 + $0x80] sm:$0xff]  }
  0x7d   : > { %4938 = vmatprep.mubr.msk.bf16.mxu1 %vm403_vm0, %v5348_v13  ;;  %v5414_v13 = vld [vmem:[%s5505_s11 + $0x100] sm:$0xff]  }
  0x83   : > { %4787 = vmatmul.mubr.msk.bf16.gmra.mrb[24].mxu0 %vm403_vm0, %v5349_v14  ;;  %v5415_v14 = vld [vmem:[%s5505_s11 + $0x88] sm:$0xff]  }
  0x84   : > { %4939 = vmatmul.mubr.msk.bf16.gmra.mrb[24].mxu1 %vm403_vm0, %v5350_v15  ;;  %4790 = vmatprep.mubr.msk.bf16.mxu0 %vm403_vm0, %v5351_v16  ;;  %v5416_v15 = vld [vmem:[%s5505_s11 + $0x108] sm:$0xff]   ;;  %v5417_v16 = vld [vmem:[%s5505_s11 + $0x90] sm:$0xff]  }
  0x85   : > { %4942 = vmatprep.mubr.msk.bf16.mxu1 %vm403_vm0, %v5352_v17  ;;  %v5418_v17 = vld [vmem:[%s5505_s11 + $0x110] sm:$0xff]  }
  0x8b   : > { %4791 = vmatmul.mubr.msk.bf16.gmra.mrb[28].mxu0 %vm403_vm0, %v5353_v18  ;;  %v5419_v18 = vld [vmem:[%s5505_s11 + $0x98] sm:$0xff]  }
  0x8c   : > { %4943 = vmatmul.mubr.msk.bf16.gmra.mrb[28].mxu1 %vm403_vm0, %v5354_v19  ;;  %4800 = vmatprep.mubr.msk.bf16.mxu0 %vm403_vm0, %v5355_v20  ;;  %v5420_v19 = vld [vmem:[%s5505_s11 + $0x118] sm:$0xff]   ;;  %v5421_v20 = vld [vmem:[%s5505_s11 + $0xa0] sm:$0xff]  }
  0x8d   : > { %4952 = vmatprep.mubr.msk.bf16.mxu1 %vm403_vm0, %v5356_v21  ;;  %v5422_v21 = vld [vmem:[%s5505_s11 + $0x120] sm:$0xff]  }
  0x93   : > { %4801 = vmatmul.mubr.msk.bf16.vlgmr.msra.gmra.mrb[0].mxu0 %vm403_vm0, %v5357_v22  ;;  %v5423_v22 = vld [vmem:[%s5505_s11 + $0xa8] sm:$0xff]  }
  0x94   : > { %4953 = vmatmul.mubr.msk.bf16.vlgmr.msra.gmra.mrb[0].mxu1 %vm403_vm0, %v5359_v23  ;;  %4833 = vmatpush3.bf16.msra.mxu0 %v5631_v60  ;;  %v5397_v60 = vld [vmem:[%s5505_s11 + $0x40] sm:$0xff]   ;;  %v5424_v23 = vld [vmem:[%s5505_s11 + $0x128] sm:$0xff]  }
  0x95   : > { %4985 = vmatpush3.bf16.msra.mxu1 %v5360_v61  ;;  %4804 = vmatprep.mubr.msk.bf16.mxu0 %vm403_vm0, %v5361_v24  ;;  %v5398_v61 = vld [vmem:[%s5505_s11 + $0xc0] sm:$0xff]   ;;  %s5964_s11 = smov 0  }
  0x96   : > { %4956 = vmatprep.mubr.msk.bf16.mxu1 %vm403_vm0, %v5362_v25  ;;  %4834 = vmatprep.subr.bf16.mxu0 %v5369_v26  ;;  %v5829_v24 = vld [vmem:[%s6044_s3] sm:$0xf] }
  0x97   : > { %4986 = vmatprep.subr.bf16.mxu1 %v5370_v27  ;;  %v5834_v25 = vld [vmem:[%s6043_s2] ss:$0 sm:$0xff] }
  0x98   : > { %4835 = vmatpush3.bf16.msra.mxu0 %v5369_v26 }
  0x99   : > { %4987 = vmatpush3.bf16.msra.mxu1 %v5370_v27  ;;  %4836 = vmatprep.subr.bf16.mxu0 %v5383_v29 }
  0x9a   : > { %4988 = vmatprep.subr.bf16.mxu1 %v5384_v30 }
  0x9b   : > { %4805 = vmatmul.mubr.msk.bf16.gmra.mrb[4].mxu0 %vm403_vm0, %v5363_v28 }
  0x9c   : > { %4957 = vmatmul.mubr.msk.bf16.gmra.mrb[4].mxu1 %vm403_vm0, %v5364_v31  ;;  %4808 = vmatprep.mubr.msk.bf16.mxu0 %vm403_vm0, %v5365_v32 }
  0x9d   : > { %4960 = vmatprep.mubr.msk.bf16.mxu1 %vm403_vm0, %v5366_v33  ;;  %4837 = vmatpush3.bf16.msra.mxu0 %v5383_v29 }
  0x9e   : > { %4989 = vmatpush3.bf16.msra.mxu1 %v5384_v30 }
  0xa3   : > { %4809 = vmatmul.mubr.msk.bf16.gmra.mrb[8].mxu0 %vm403_vm0, %v5367_v34 }
  0xa4   : > { %4961 = vmatmul.mubr.msk.bf16.gmra.mrb[8].mxu1 %vm403_vm0, %v5368_v35  ;;  %4812 = vmatprep.mubr.msk.bf16.mxu0 %vm403_vm0, %v5371_v36 }
  0xa5   : > { %4964 = vmatprep.mubr.msk.bf16.mxu1 %vm403_vm0, %v5372_v37 }
  0xab   : > { %4813 = vmatmul.mubr.msk.bf16.gmra.mrb[12].mxu0 %vm403_vm0, %v5373_v38 }
  0xac   : > { %4965 = vmatmul.mubr.msk.bf16.gmra.mrb[12].mxu1 %vm403_vm0, %v5374_v39  ;;  %4816 = vmatprep.mubr.msk.bf16.mxu0 %vm403_vm0, %v5375_v40 }
  0xad   : > { %4968 = vmatprep.mubr.msk.bf16.mxu1 %vm403_vm0, %v5376_v41 }
  0xb3   : > { %4817 = vmatmul.mubr.msk.bf16.gmra.mrb[16].mxu0 %vm403_vm0, %v5377_v42 }
  0xb4   : > { %4969 = vmatmul.mubr.msk.bf16.gmra.mrb[16].mxu1 %vm403_vm0, %v5378_v43  ;;  %4820 = vmatprep.mubr.msk.bf16.mxu0 %vm403_vm0, %v5379_v44 }
  0xb5   : > { %4972 = vmatprep.mubr.msk.bf16.mxu1 %vm403_vm0, %v5380_v45 }
  0xbb   : > { %4821 = vmatmul.mubr.msk.bf16.gmra.mrb[20].mxu0 %vm403_vm0, %v5381_v46 }
  0xbc   : > { %4973 = vmatmul.mubr.msk.bf16.gmra.mrb[20].mxu1 %vm403_vm0, %v5382_v47  ;;  %4824 = vmatprep.mubr.msk.bf16.mxu0 %vm403_vm0, %v5385_v48 }
  0xbd   : > { %4976 = vmatprep.mubr.msk.bf16.mxu1 %vm403_vm0, %v5386_v49 }
  0xc3   : > { %4825 = vmatmul.mubr.msk.bf16.gmra.mrb[24].mxu0 %vm403_vm0, %v5387_v50 }
  0xc4   : > { %4977 = vmatmul.mubr.msk.bf16.gmra.mrb[24].mxu1 %vm403_vm0, %v5388_v51  ;;  %4828 = vmatprep.mubr.msk.bf16.mxu0 %vm403_vm0, %v5389_v52 }
  0xc5   : > { %4980 = vmatprep.mubr.msk.bf16.mxu1 %vm403_vm0, %v5390_v53 }
  0xcb   : > { %4829 = vmatmul.mubr.msk.bf16.gmra.mrb[28].mxu0 %vm403_vm0, %v5391_v54 }
  0xcc   : > { %4981 = vmatmul.mubr.msk.bf16.gmra.mrb[28].mxu1 %vm403_vm0, %v5392_v55  ;;  %4838 = vmatprep.mubr.msk.bf16.mxu0 %vm403_vm0, %v5393_v56 }
  0xcd   : > { %4990 = vmatprep.mubr.msk.bf16.mxu1 %vm403_vm0, %v5394_v57 }
  0xd3   : > { %4839 = vmatmul.mubr.msk.bf16.vlgmr.msra.gmra.mrb[0].mxu0 %vm403_vm0, %v5395_v58 }
  0xd4   : > { %4991 = vmatmul.mubr.msk.bf16.vlgmr.msra.gmra.mrb[0].mxu1 %vm403_vm0, %v5396_v59  ;;  %4842 = vmatprep.mubr.msk.bf16.mxu0 %vm403_vm0, %v5397_v60 }
  0xd5   : > { %4994 = vmatprep.mubr.msk.bf16.mxu1 %vm403_vm0, %v5398_v61 }
  0xdb   : > { %4843 = vmatmul.mubr.msk.bf16.gmra.mrb[4].mxu0 %vm403_vm0, %v5399_v62 }
  0xdc   : > { %4995 = vmatmul.mubr.msk.bf16.gmra.mrb[4].mxu1 %vm403_vm0, %v5400_v63  ;;  %4846 = vmatprep.mubr.msk.bf16.mxu0 %vm403_vm0, %v5401_v0 }
  0xdd   : > { %4998 = vmatprep.mubr.msk.bf16.mxu1 %vm403_vm0, %v5402_v1 }
  0xe3   : > { %4847 = vmatmul.mubr.msk.bf16.gmra.mrb[8].mxu0 %vm403_vm0, %v5403_v2 }
  0xe4   : > { %4999 = vmatmul.mubr.msk.bf16.gmra.mrb[8].mxu1 %vm403_vm0, %v5404_v3  ;;  %4850 = vmatprep.mubr.msk.bf16.mxu0 %vm403_vm0, %v5405_v4 }
  0xe5   : > { %5002 = vmatprep.mubr.msk.bf16.mxu1 %vm403_vm0, %v5406_v5 }
  0xeb   : > { %4851 = vmatmul.mubr.msk.bf16.gmra.mrb[12].mxu0 %vm403_vm0, %v5407_v6 }
  0xec   : > { %5003 = vmatmul.mubr.msk.bf16.gmra.mrb[12].mxu1 %vm403_vm0, %v5408_v7  ;;  %4854 = vmatprep.mubr.msk.bf16.mxu0 %vm403_vm0, %v5409_v8 }
  0xed   : > { %5006 = vmatprep.mubr.msk.bf16.mxu1 %vm403_vm0, %v5410_v9 }
  0xf3   : > { %4855 = vmatmul.mubr.msk.bf16.gmra.mrb[16].mxu0 %vm403_vm0, %v5411_v10 }
  0xf4   : > { %5007 = vmatmul.mubr.msk.bf16.gmra.mrb[16].mxu1 %vm403_vm0, %v5412_v11  ;;  %4858 = vmatprep.mubr.msk.bf16.mxu0 %vm403_vm0, %v5413_v12 }
  0xf5   : > { %5010 = vmatprep.mubr.msk.bf16.mxu1 %vm403_vm0, %v5414_v13 }
  0xfb   : > { %4859 = vmatmul.mubr.msk.bf16.gmra.mrb[20].mxu0 %vm403_vm0, %v5415_v14 }
  0xfc   : > { %5011 = vmatmul.mubr.msk.bf16.gmra.mrb[20].mxu1 %vm403_vm0, %v5416_v15  ;;  %4862 = vmatprep.mubr.msk.bf16.mxu0 %vm403_vm0, %v5417_v16 }
  0xfd   : > { %5014 = vmatprep.mubr.msk.bf16.mxu1 %vm403_vm0, %v5418_v17 }
 0x103   : > { %4863 = vmatmul.mubr.msk.bf16.gmra.mrb[24].mxu0 %vm403_vm0, %v5419_v18 }
 0x104   : > { %5015 = vmatmul.mubr.msk.bf16.gmra.mrb[24].mxu1 %vm403_vm0, %v5420_v19  ;;  %4866 = vmatprep.mubr.msk.bf16.mxu0 %vm403_vm0, %v5421_v20 }
 0x105   : > { %5018 = vmatprep.mubr.msk.bf16.mxu1 %vm403_vm0, %v5422_v21 }
 0x10b   : > { %4867 = vmatmul.mubr.msk.bf16.gmra.mrb[28].mxu0 %vm403_vm0, %v5423_v22 }
 0x10c   : > { %5019 = vmatmul.mubr.msk.bf16.gmra.mrb[28].mxu1 %vm403_vm0, %v5424_v23 }
 0x1a6   : > { %v4840_v26 = vpop.f32.mrb[0].mxu0 }
 0x1a7   : > { %v1686_v27 = vadd.f32 %v4840_v26, %v5834_v25  ;;  %v4992_v28 = vpop.f32.mrb[0].mxu1  ;;  %v1519_v29 = vpop.f32.mrb[1].mxu0 }
 0x1a8   : > { %v3231_v30 = vadd.f32 %v4992_v28, %v5834_v25  ;;  %v1684_v31 = vadd.f32 %v5834_v25, %v1519_v29  ;;  %v3070_v32 = vpop.f32.mrb[1].mxu1  ;;  %v4841_v33 = vpop.f32.mrb[2].mxu0 }
 0x1a9   : > { %v1718_v34 = vmax.f32 %v1686_v27, 0.0  ;;  %v3229_v35 = vadd.f32 %v5834_v25, %v3070_v32  ;;  %v1687_v36 = vadd.f32 %v4841_v33, %v5834_v25  ;;  %v4993_v37 = vpop.f32.mrb[2].mxu1  ;;  %v1522_v38 = vpop.f32.mrb[3].mxu0 }
 0x1aa   : > { %v3263_v39 = vmax.f32 %v3231_v30, 0.0  ;;  %v1716_v40 = vmax.f32 %v1684_v31, 0.0  ;;  %v3232_v41 = vadd.f32 %v4993_v37, %v5834_v25  ;;  %v1685_v42 = vadd.f32 %v5834_v25, %v1522_v38  ;;  %v3073_v43 = vpop.f32.mrb[3].mxu1 }
 0x1ab   : > { %1751 = vst.msk [vmem:[#allocation2 + $0x10] sm:$0xff] %vm1748_vm1, %v1718_v34  ;;  %v3261_v44 = vmax.f32 %v3229_v35, 0.0  ;;  %v1719_v45 = vmax.f32 %v1687_v36, 0.0  ;;  %v3230_v46 = vadd.f32 %v5834_v25, %v3073_v43 }
 0x1ac   : > { %3296 = vst.msk [vmem:[#allocation2 + $0x110] sm:$0xff] %vm1748_vm1, %v3263_v39  ;;  %1749 = vst.msk [vmem:[#allocation2] sm:$0xff] %vm1748_vm1, %v1716_v40  ;;  %v3264_v47 = vmax.f32 %v3232_v41, 0.0  ;;  %v1717_v48 = vmax.f32 %v1685_v42, 0.0 }
 0x1ad   : > { %3294 = vst.msk [vmem:[#allocation2 + $0x100] sm:$0xff] %vm1748_vm1, %v3261_v44  ;;  %1752 = vst.msk [vmem:[#allocation2 + $0x18] sm:$0xff] %vm1748_vm1, %v1719_v45  ;;  %v3262_v49 = vmax.f32 %v3230_v46, 0.0 }
 0x1ae   : > { %3297 = vst.msk [vmem:[#allocation2 + $0x118] sm:$0xff] %vm1748_vm1, %v3264_v47  ;;  %1750 = vst.msk [vmem:[#allocation2 + $0x8] sm:$0xff] %vm1748_vm1, %v1717_v48  ;;  %v4844_v50 = vpop.f32.mrb[4].mxu0 }
 0x1af   : > { %3295 = vst.msk [vmem:[#allocation2 + $0x108] sm:$0xff] %vm1748_vm1, %v3262_v49  ;;  %v1690_v51 = vadd.f32 %v4844_v50, %v5834_v25  ;;  %v4996_v52 = vpop.f32.mrb[4].mxu1  ;;  %v1535_v53 = vpop.f32.mrb[5].mxu0 }
 0x1b0   : > { %v3235_v54 = vadd.f32 %v4996_v52, %v5834_v25  ;;  %v1688_v55 = vadd.f32 %v5834_v25, %v1535_v53  ;;  %v3086_v56 = vpop.f32.mrb[5].mxu1  ;;  %v4845_v57 = vpop.f32.mrb[6].mxu0 }
 0x1b1   : > { %v1722_v58 = vmax.f32 %v1690_v51, 0.0  ;;  %v3233_v59 = vadd.f32 %v5834_v25, %v3086_v56  ;;  %v1691_v60 = vadd.f32 %v4845_v57, %v5834_v25  ;;  %v4997_v61 = vpop.f32.mrb[6].mxu1  ;;  %v1538_v62 = vpop.f32.mrb[7].mxu0 }
 0x1b2   : > { %v3267_v63 = vmax.f32 %v3235_v54, 0.0  ;;  %v1720_v0 = vmax.f32 %v1688_v55, 0.0  ;;  %v3236_v1 = vadd.f32 %v4997_v61, %v5834_v25  ;;  %v1689_v2 = vadd.f32 %v5834_v25, %v1538_v62  ;;  %v3089_v3 = vpop.f32.mrb[7].mxu1 }
 0x1b3   : > { %1755 = vst.msk [vmem:[#allocation2 + $0x30] sm:$0xff] %vm1748_vm1, %v1722_v58  ;;  %v3265_v4 = vmax.f32 %v3233_v59, 0.0  ;;  %v1723_v5 = vmax.f32 %v1691_v60, 0.0  ;;  %v3234_v6 = vadd.f32 %v5834_v25, %v3089_v3 }
 0x1b4   : > { %3300 = vst.msk [vmem:[#allocation2 + $0x130] sm:$0xff] %vm1748_vm1, %v3267_v63  ;;  %1753 = vst.msk [vmem:[#allocation2 + $0x20] sm:$0xff] %vm1748_vm1, %v1720_v0  ;;  %v3268_v7 = vmax.f32 %v3236_v1, 0.0  ;;  %v1721_v8 = vmax.f32 %v1689_v2, 0.0 }
 0x1b5   : > { %3298 = vst.msk [vmem:[#allocation2 + $0x120] sm:$0xff] %vm1748_vm1, %v3265_v4  ;;  %1756 = vst.msk [vmem:[#allocation2 + $0x38] sm:$0xff] %vm1748_vm1, %v1723_v5  ;;  %v3266_v9 = vmax.f32 %v3234_v6, 0.0 }
 0x1b6   : > { %3301 = vst.msk [vmem:[#allocation2 + $0x138] sm:$0xff] %vm1748_vm1, %v3268_v7  ;;  %1754 = vst.msk [vmem:[#allocation2 + $0x28] sm:$0xff] %vm1748_vm1, %v1721_v8  ;;  %v4848_v10 = vpop.f32.mrb[8].mxu0 }
 0x1b7   : > { %3299 = vst.msk [vmem:[#allocation2 + $0x128] sm:$0xff] %vm1748_vm1, %v3266_v9  ;;  %v1694_v11 = vadd.f32 %v4848_v10, %v5834_v25  ;;  %v5000_v12 = vpop.f32.mrb[8].mxu1  ;;  %v1551_v13 = vpop.f32.mrb[9].mxu0 }
 0x1b8   : > { %v3239_v14 = vadd.f32 %v5000_v12, %v5834_v25  ;;  %v1692_v15 = vadd.f32 %v5834_v25, %v1551_v13  ;;  %v3102_v16 = vpop.f32.mrb[9].mxu1  ;;  %v4849_v17 = vpop.f32.mrb[10].mxu0 }
 0x1b9   : > { %v1726_v18 = vmax.f32 %v1694_v11, 0.0  ;;  %v3237_v19 = vadd.f32 %v5834_v25, %v3102_v16  ;;  %v1695_v20 = vadd.f32 %v4849_v17, %v5834_v25  ;;  %v5001_v21 = vpop.f32.mrb[10].mxu1  ;;  %v1554_v22 = vpop.f32.mrb[11].mxu0 }
 0x1ba   : > { %v3271_v23 = vmax.f32 %v3239_v14, 0.0  ;;  %v1724_v26 = vmax.f32 %v1692_v15, 0.0  ;;  %v3240_v27 = vadd.f32 %v5001_v21, %v5834_v25  ;;  %v1693_v28 = vadd.f32 %v5834_v25, %v1554_v22  ;;  %v3105_v29 = vpop.f32.mrb[11].mxu1 }
 0x1bb   : > { %1759 = vst.msk [vmem:[#allocation2 + $0x50] sm:$0xff] %vm1748_vm1, %v1726_v18  ;;  %v3269_v30 = vmax.f32 %v3237_v19, 0.0  ;;  %v1727_v31 = vmax.f32 %v1695_v20, 0.0  ;;  %v3238_v32 = vadd.f32 %v5834_v25, %v3105_v29 }
 0x1bc   : > { %3304 = vst.msk [vmem:[#allocation2 + $0x150] sm:$0xff] %vm1748_vm1, %v3271_v23  ;;  %1757 = vst.msk [vmem:[#allocation2 + $0x40] sm:$0xff] %vm1748_vm1, %v1724_v26  ;;  %v3272_v33 = vmax.f32 %v3240_v27, 0.0  ;;  %v1725_v34 = vmax.f32 %v1693_v28, 0.0 }
 0x1bd   : > { %3302 = vst.msk [vmem:[#allocation2 + $0x140] sm:$0xff] %vm1748_vm1, %v3269_v30  ;;  %1760 = vst.msk [vmem:[#allocation2 + $0x58] sm:$0xff] %vm1748_vm1, %v1727_v31  ;;  %v3270_v35 = vmax.f32 %v3238_v32, 0.0 }
 0x1be   : > { %3305 = vst.msk [vmem:[#allocation2 + $0x158] sm:$0xff] %vm1748_vm1, %v3272_v33  ;;  %1758 = vst.msk [vmem:[#allocation2 + $0x48] sm:$0xff] %vm1748_vm1, %v1725_v34  ;;  %v4852_v36 = vpop.f32.mrb[12].mxu0 }
 0x1bf   : > { %3303 = vst.msk [vmem:[#allocation2 + $0x148] sm:$0xff] %vm1748_vm1, %v3270_v35  ;;  %v1698_v37 = vadd.f32 %v4852_v36, %v5834_v25  ;;  %v5004_v38 = vpop.f32.mrb[12].mxu1  ;;  %v1567_v39 = vpop.f32.mrb[13].mxu0 }
 0x1c0   : > { %v3243_v40 = vadd.f32 %v5004_v38, %v5834_v25  ;;  %v1696_v41 = vadd.f32 %v5834_v25, %v1567_v39  ;;  %v3118_v42 = vpop.f32.mrb[13].mxu1  ;;  %v4853_v43 = vpop.f32.mrb[14].mxu0 }
 0x1c1   : > { %v1730_v44 = vmax.f32 %v1698_v37, 0.0  ;;  %v3241_v45 = vadd.f32 %v5834_v25, %v3118_v42  ;;  %v1699_v46 = vadd.f32 %v4853_v43, %v5834_v25  ;;  %v5005_v47 = vpop.f32.mrb[14].mxu1  ;;  %v1570_v48 = vpop.f32.mrb[15].mxu0 }
 0x1c2   : > { %v3275_v49 = vmax.f32 %v3243_v40, 0.0  ;;  %v1728_v50 = vmax.f32 %v1696_v41, 0.0  ;;  %v3244_v51 = vadd.f32 %v5005_v47, %v5834_v25  ;;  %v1697_v52 = vadd.f32 %v5834_v25, %v1570_v48  ;;  %v3121_v53 = vpop.f32.mrb[15].mxu1 }
 0x1c3   : > { %1763 = vst.msk [vmem:[#allocation2 + $0x70] sm:$0xff] %vm1748_vm1, %v1730_v44  ;;  %v3273_v54 = vmax.f32 %v3241_v45, 0.0  ;;  %v1731_v55 = vmax.f32 %v1699_v46, 0.0  ;;  %v3242_v56 = vadd.f32 %v5834_v25, %v3121_v53 }
 0x1c4   : > { %3308 = vst.msk [vmem:[#allocation2 + $0x170] sm:$0xff] %vm1748_vm1, %v3275_v49  ;;  %1761 = vst.msk [vmem:[#allocation2 + $0x60] sm:$0xff] %vm1748_vm1, %v1728_v50  ;;  %v3276_v57 = vmax.f32 %v3244_v51, 0.0  ;;  %v1729_v58 = vmax.f32 %v1697_v52, 0.0 }
 0x1c5   : > { %3306 = vst.msk [vmem:[#allocation2 + $0x160] sm:$0xff] %vm1748_vm1, %v3273_v54  ;;  %1764 = vst.msk [vmem:[#allocation2 + $0x78] sm:$0xff] %vm1748_vm1, %v1731_v55  ;;  %v3274_v59 = vmax.f32 %v3242_v56, 0.0 }
 0x1c6   : > { %3309 = vst.msk [vmem:[#allocation2 + $0x178] sm:$0xff] %vm1748_vm1, %v3276_v57  ;;  %1762 = vst.msk [vmem:[#allocation2 + $0x68] sm:$0xff] %vm1748_vm1, %v1729_v58  ;;  %v4856_v60 = vpop.f32.mrb[16].mxu0 }
 0x1c7   : > { %3307 = vst.msk [vmem:[#allocation2 + $0x168] sm:$0xff] %vm1748_vm1, %v3274_v59  ;;  %v1702_v61 = vadd.f32 %v4856_v60, %v5834_v25  ;;  %v5008_v62 = vpop.f32.mrb[16].mxu1  ;;  %v1583_v63 = vpop.f32.mrb[17].mxu0 }
 0x1c8   : > { %v3247_v0 = vadd.f32 %v5008_v62, %v5834_v25  ;;  %v1700_v1 = vadd.f32 %v5834_v25, %v1583_v63  ;;  %v3134_v2 = vpop.f32.mrb[17].mxu1  ;;  %v4857_v3 = vpop.f32.mrb[18].mxu0 }
 0x1c9   : > { %v1734_v4 = vmax.f32 %v1702_v61, 0.0  ;;  %v3245_v5 = vadd.f32 %v5834_v25, %v3134_v2  ;;  %v1703_v6 = vadd.f32 %v4857_v3, %v5834_v25  ;;  %v5009_v7 = vpop.f32.mrb[18].mxu1  ;;  %v1586_v8 = vpop.f32.mrb[19].mxu0 }
 0x1ca   : > { %v3279_v9 = vmax.f32 %v3247_v0, 0.0  ;;  %v1732_v10 = vmax.f32 %v1700_v1, 0.0  ;;  %v3248_v11 = vadd.f32 %v5009_v7, %v5834_v25  ;;  %v1701_v12 = vadd.f32 %v5834_v25, %v1586_v8  ;;  %v3137_v13 = vpop.f32.mrb[19].mxu1 }
 0x1cb   : > { %1767 = vst.msk [vmem:[#allocation2 + $0x90] sm:$0xff] %vm1748_vm1, %v1734_v4  ;;  %v3277_v14 = vmax.f32 %v3245_v5, 0.0  ;;  %v1735_v15 = vmax.f32 %v1703_v6, 0.0  ;;  %v3246_v16 = vadd.f32 %v5834_v25, %v3137_v13 }
 0x1cc   : > { %3312 = vst.msk [vmem:[#allocation2 + $0x190] sm:$0xff] %vm1748_vm1, %v3279_v9  ;;  %1765 = vst.msk [vmem:[#allocation2 + $0x80] sm:$0xff] %vm1748_vm1, %v1732_v10  ;;  %v3280_v17 = vmax.f32 %v3248_v11, 0.0  ;;  %v1733_v18 = vmax.f32 %v1701_v12, 0.0 }
 0x1cd   : > { %3310 = vst.msk [vmem:[#allocation2 + $0x180] sm:$0xff] %vm1748_vm1, %v3277_v14  ;;  %1768 = vst.msk [vmem:[#allocation2 + $0x98] sm:$0xff] %vm1748_vm1, %v1735_v15  ;;  %v3278_v19 = vmax.f32 %v3246_v16, 0.0 }
 0x1ce   : > { %3313 = vst.msk [vmem:[#allocation2 + $0x198] sm:$0xff] %vm1748_vm1, %v3280_v17  ;;  %1766 = vst.msk [vmem:[#allocation2 + $0x88] sm:$0xff] %vm1748_vm1, %v1733_v18  ;;  %v4860_v20 = vpop.f32.mrb[20].mxu0 }
 0x1cf   : > { %3311 = vst.msk [vmem:[#allocation2 + $0x188] sm:$0xff] %vm1748_vm1, %v3278_v19  ;;  %v1706_v21 = vadd.f32 %v4860_v20, %v5834_v25  ;;  %v5012_v22 = vpop.f32.mrb[20].mxu1  ;;  %v1599_v23 = vpop.f32.mrb[21].mxu0 }
 0x1d0   : > { %v3251_v26 = vadd.f32 %v5012_v22, %v5834_v25  ;;  %v1704_v27 = vadd.f32 %v5834_v25, %v1599_v23  ;;  %v3150_v28 = vpop.f32.mrb[21].mxu1  ;;  %v4861_v29 = vpop.f32.mrb[22].mxu0 }
 0x1d1   : > { %v1738_v30 = vmax.f32 %v1706_v21, 0.0  ;;  %v3249_v31 = vadd.f32 %v5834_v25, %v3150_v28  ;;  %v1707_v32 = vadd.f32 %v4861_v29, %v5834_v25  ;;  %v5013_v33 = vpop.f32.mrb[22].mxu1  ;;  %v1602_v34 = vpop.f32.mrb[23].mxu0 }
 0x1d2   : > { %v3283_v35 = vmax.f32 %v3251_v26, 0.0  ;;  %v1736_v36 = vmax.f32 %v1704_v27, 0.0  ;;  %v3252_v37 = vadd.f32 %v5013_v33, %v5834_v25  ;;  %v1705_v38 = vadd.f32 %v5834_v25, %v1602_v34  ;;  %v3153_v39 = vpop.f32.mrb[23].mxu1 }
 0x1d3   : > { %1771 = vst.msk [vmem:[#allocation2 + $0xb0] sm:$0xff] %vm1748_vm1, %v1738_v30  ;;  %v3281_v40 = vmax.f32 %v3249_v31, 0.0  ;;  %v1739_v41 = vmax.f32 %v1707_v32, 0.0  ;;  %v3250_v42 = vadd.f32 %v5834_v25, %v3153_v39 }
 0x1d4   : > { %3316 = vst.msk [vmem:[#allocation2 + $0x1b0] sm:$0xff] %vm1748_vm1, %v3283_v35  ;;  %1769 = vst.msk [vmem:[#allocation2 + $0xa0] sm:$0xff] %vm1748_vm1, %v1736_v36  ;;  %v3284_v43 = vmax.f32 %v3252_v37, 0.0  ;;  %v1737_v44 = vmax.f32 %v1705_v38, 0.0 }
 0x1d5   : > { %3314 = vst.msk [vmem:[#allocation2 + $0x1a0] sm:$0xff] %vm1748_vm1, %v3281_v40  ;;  %1772 = vst.msk [vmem:[#allocation2 + $0xb8] sm:$0xff] %vm1748_vm1, %v1739_v41  ;;  %v3282_v45 = vmax.f32 %v3250_v42, 0.0 }
 0x1d6   : > { %3317 = vst.msk [vmem:[#allocation2 + $0x1b8] sm:$0xff] %vm1748_vm1, %v3284_v43  ;;  %1770 = vst.msk [vmem:[#allocation2 + $0xa8] sm:$0xff] %vm1748_vm1, %v1737_v44  ;;  %v4864_v46 = vpop.f32.mrb[24].mxu0 }
 0x1d7   : > { %3315 = vst.msk [vmem:[#allocation2 + $0x1a8] sm:$0xff] %vm1748_vm1, %v3282_v45  ;;  %v1710_v47 = vadd.f32 %v4864_v46, %v5834_v25  ;;  %v5016_v48 = vpop.f32.mrb[24].mxu1  ;;  %v1615_v49 = vpop.f32.mrb[25].mxu0 }
 0x1d8   : > { %v3255_v50 = vadd.f32 %v5016_v48, %v5834_v25  ;;  %v1708_v51 = vadd.f32 %v5834_v25, %v1615_v49  ;;  %v3166_v52 = vpop.f32.mrb[25].mxu1  ;;  %v4865_v53 = vpop.f32.mrb[26].mxu0 }
 0x1d9   : > { %v1742_v54 = vmax.f32 %v1710_v47, 0.0  ;;  %v3253_v55 = vadd.f32 %v5834_v25, %v3166_v52  ;;  %v1711_v56 = vadd.f32 %v4865_v53, %v5834_v25  ;;  %v5017_v57 = vpop.f32.mrb[26].mxu1  ;;  %v1618_v58 = vpop.f32.mrb[27].mxu0 }
 0x1da   : > { %v3287_v59 = vmax.f32 %v3255_v50, 0.0  ;;  %v1740_v60 = vmax.f32 %v1708_v51, 0.0  ;;  %v3256_v61 = vadd.f32 %v5017_v57, %v5834_v25  ;;  %v1709_v62 = vadd.f32 %v5834_v25, %v1618_v58  ;;  %v3169_v63 = vpop.f32.mrb[27].mxu1 }
 0x1db   : > { %1775 = vst.msk [vmem:[#allocation2 + $0xd0] sm:$0xff] %vm1748_vm1, %v1742_v54  ;;  %v3285_v0 = vmax.f32 %v3253_v55, 0.0  ;;  %v1743_v1 = vmax.f32 %v1711_v56, 0.0  ;;  %v3254_v2 = vadd.f32 %v5834_v25, %v3169_v63 }
 0x1dc   : > { %3320 = vst.msk [vmem:[#allocation2 + $0x1d0] sm:$0xff] %vm1748_vm1, %v3287_v59  ;;  %1773 = vst.msk [vmem:[#allocation2 + $0xc0] sm:$0xff] %vm1748_vm1, %v1740_v60  ;;  %v3288_v3 = vmax.f32 %v3256_v61, 0.0  ;;  %v1741_v4 = vmax.f32 %v1709_v62, 0.0 }
 0x1dd   : > { %3318 = vst.msk [vmem:[#allocation2 + $0x1c0] sm:$0xff] %vm1748_vm1, %v3285_v0  ;;  %1776 = vst.msk [vmem:[#allocation2 + $0xd8] sm:$0xff] %vm1748_vm1, %v1743_v1  ;;  %v3286_v5 = vmax.f32 %v3254_v2, 0.0 }
 0x1de   : > { %3321 = vst.msk [vmem:[#allocation2 + $0x1d8] sm:$0xff] %vm1748_vm1, %v3288_v3  ;;  %1774 = vst.msk [vmem:[#allocation2 + $0xc8] sm:$0xff] %vm1748_vm1, %v1741_v4  ;;  %v4868_v6 = vpop.f32.mrb[28].mxu0 }
 0x1df   : > { %3319 = vst.msk [vmem:[#allocation2 + $0x1c8] sm:$0xff] %vm1748_vm1, %v3286_v5  ;;  %v1714_v7 = vadd.f32 %v4868_v6, %v5834_v25  ;;  %v5020_v8 = vpop.f32.mrb[28].mxu1  ;;  %v1631_v9 = vpop.f32.mrb[29].mxu0 }
 0x1e0   : > { %v3259_v10 = vadd.f32 %v5020_v8, %v5834_v25  ;;  %v1712_v11 = vadd.f32 %v5834_v25, %v1631_v9  ;;  %v3182_v12 = vpop.f32.mrb[29].mxu1  ;;  %v4869_v13 = vpop.f32.mrb[30].mxu0 }
 0x1e1   : > { %v1746_v14 = vmax.f32 %v1714_v7, 0.0  ;;  %v3257_v15 = vadd.f32 %v5834_v25, %v3182_v12  ;;  %v1715_v16 = vadd.f32 %v4869_v13, %v5834_v25  ;;  %v5021_v17 = vpop.f32.mrb[30].mxu1  ;;  %v1634_v18 = vpop.f32.mrb[31].mxu0 }
 0x1e2   : > { %v3291_v19 = vmax.f32 %v3259_v10, 0.0  ;;  %v1744_v20 = vmax.f32 %v1712_v11, 0.0  ;;  %v3260_v21 = vadd.f32 %v5021_v17, %v5834_v25  ;;  %v1713_v22 = vadd.f32 %v5834_v25, %v1634_v18  ;;  %v3185_v23 = vpop.f32.mrb[31].mxu1 }
 0x1e3   : > { %1779 = vst.msk [vmem:[#allocation2 + $0xf0] sm:$0xff] %vm1748_vm1, %v1746_v14  ;;  %v3289_v26 = vmax.f32 %v3257_v15, 0.0  ;;  %v1747_v27 = vmax.f32 %v1715_v16, 0.0  ;;  %v3258_v28 = vadd.f32 %v5834_v25, %v3185_v23 }
 0x1e4   : > { %3324 = vst.msk [vmem:[#allocation2 + $0x1f0] sm:$0xff] %vm1748_vm1, %v3291_v19  ;;  %1777 = vst.msk [vmem:[#allocation2 + $0xe0] sm:$0xff] %vm1748_vm1, %v1744_v20  ;;  %v3292_v29 = vmax.f32 %v3260_v21, 0.0  ;;  %v1745_v30 = vmax.f32 %v1713_v22, 0.0 }
 0x1e5   : > { %3322 = vst.msk [vmem:[#allocation2 + $0x1e0] sm:$0xff] %vm1748_vm1, %v3289_v26  ;;  %1780 = vst.msk [vmem:[#allocation2 + $0xf8] sm:$0xff] %vm1748_vm1, %v1747_v27  ;;  %v3290_v31 = vmax.f32 %v3258_v28, 0.0 }
 0x1e6   : > { %3325 = vst.msk [vmem:[#allocation2 + $0x1f8] sm:$0xff] %vm1748_vm1, %v3292_v29  ;;  %1778 = vst.msk [vmem:[#allocation2 + $0xe8] sm:$0xff] %vm1748_vm1, %v1745_v30 }
 0x1e7   : > { %3323 = vst.msk [vmem:[#allocation2 + $0x1e8] sm:$0xff] %vm1748_vm1, %v3290_v31 }
 0x1e8 LB: >> { %v5441_v25 = vmov 0.0|0.0   ;;  %s4536_s9 = sshll.u32 %s5439_s11, 1  ;;  %s4538_s10 = sshll.u32 %s5439_s11, 6  ;;  %vm5442_vm2 = vmmov 0   ;;  %v5443_v32 = vmov 0.0   ;;  %vm3396_vm3 = vcmask 1046528   ;;  %s5439_s11 = sphi %s5964_s11, %s3341_s11  }
 0x1e9   : >> { %5053 = vmatprep.subr.bf16.mxu0 %v5441_v25  ;;  %5030 = vmatprep.mubr.msk.f32.mxu0 %vm5442_vm2, %v5443_v32  ;;  %s4537_s12 = sadd.s32 4294967295, %s4536_s9  ;;  %s3346_s13 = sadd.s32 1, %s4536_s9  ;;  %v3400_v41 = vrot.slane %v5443_v32, 1  ;;  %v3387_v42 = vrot.slane %v5443_v32, 7  ;;  %vm3383_vm4 = vcmask 1040384   ;;  %vm3417_vm5 = vcmask 261120  }
 0x1ea   : >> { %p3344_p4 = scmp.gt.s32.totalorder %s4537_s12, 0  ;;  %p3347_p5 = scmp.lt.s32.totalorder %s3346_s13, 15  ;;  %vm3493_vm6 = vcmask 519168  }
 0x1eb   : >> { %s3350_s17 = scalar_lea.vmem [#allocation2], %s4538_s10  ;;  %v3408_v45 = vsel %vm3396_vm3, %v3400_v41, 0.0  ;;  %s4542_s21 = sshll.u32 %s5439_s11, 2 }
 0x1ec   : >> { %s6050_s12 = smov (!%p3344_p4, %s4537_s12), 0  ;;  %s6052_s13 = smov (!%p3347_p5, %s3346_s13), 15  ;;  %v3412_v50 = vmax.f32 %v3387_v42, %v3408_v45 }
 0x1ed   : >> { %s4539_s15 = sshll.u32 %s6050_s12, 5  ;;  %s4540_s16 = sshll.u32 %s6052_s13, 5 }
 0x1ee   : >> { %v3351_v33 = vld [vmem:[%s3350_s17] sm:$0xff]  ;;  %s3356_s19 = scalar_lea.vmem [#allocation2], %s4539_s15  ;;  %v3352_v36 = vld [vmem:[%s3350_s17 + $0x8] sm:$0xff]  ;;  %s3362_s20 = scalar_lea.vmem [#allocation2], %s4540_s16  ;;  %v3416_v61 = vmax.f32 %v3412_v50, 0.0 }
 0x1ef   : >> { %v3357_v34 = vld [vmem:[%s3356_s19] sm:$0xff]  ;;  %v3358_v35 = vld [vmem:[%s3356_s19 + $0x8] sm:$0xff]  ;;  %s3492_s22 = scalar_lea.vmem [#allocation3], %s4542_s21  ;;  %s3341_s11 = sadd.s32 1, %s5439_s11  }
 0x1f0   : >> { %v3363_v37 = vld [vmem:[%s3362_s20] sm:$0xff]  ;;  %v3364_v38 = vld [vmem:[%s3362_s20 + $0x8] sm:$0xff]  ;;  %p3338_p6 = scmp.ge.s32.totalorder %s3341_s11, 8  }
 0x1f1   : >> { %v3367_v39 = vmax.f32 %v3357_v34, %v3363_v37  ;;  %v3368_v40 = vmax.f32 %v3358_v35, %v3364_v38  ;;  %v5444_v5 = vmov (%p3338_p6), 0.0   ;;  %vm3513_vm7 = vcmask (%p3338_p6), 1041409   ;;  %v5991_v38 = vld [vmem:[%s6045_s4] sm:$0xf] (%p3338_p6) }
 0x1f2   : > { %5038 = vmatprep.subr.mxu1 (%p3338_p6), %v5444_v5  ;;  %vm3516_vm8 = vcmask (%p3338_p6), 1042434   ;;  %vm3519_vm9 = vcmask (%p3338_p6), 1043459   ;;  %vm3522_vm10 = vcmask (%p3338_p6), 1044484   ;;  %vm3525_vm11 = vcmask (%p3338_p6), 1045509  }
 0x1f3   : >> { %v3371_v43 = vmax.f32 %v3351_v33, %v3367_v39  ;;  %v3372_v44 = vmax.f32 %v3352_v36, %v3368_v40  ;;  %vm3528_vm12 = vcmask (%p3338_p6), 1046534   ;;  %vm3531_vm13 = vcmask (%p3338_p6), 1047559  }
 0x1f4   : > { %vm5445_vm14 = vmmov (%p3338_p6), 0   ;;  %vm3534_vm15 = vcmask (%p3338_p6), 64512  }
 0x1f5   : >> { %v3384_v46 = vrot.slane %v3371_v43, 7  ;;  %v3385_v47 = vrot.slane %v3372_v44, 7  ;;  %v3397_v48 = vrot.slane %v3371_v43, 1  ;;  %v3398_v49 = vrot.slane %v3372_v44, 1  ;;  %5040 = vmatprep.mubr.msk.f32.mxu1 (%p3338_p6), %vm5445_vm14, %v5444_v5 }
 0x1f7   : >> { %v3386_v51 = vsel %vm3383_vm4, %v3384_v46, %v3385_v47  ;;  %v3395_v52 = vsel %vm3383_vm4, 0.0, %v3384_v46  ;;  %v3399_v53 = vsel %vm3396_vm3, %v3397_v48, %v3398_v49  ;;  %v3401_v54 = vsel %vm3396_vm3, %v3398_v49, %v3400_v41 }
 0x1f8   : >> { %v3409_v55 = vmax.f32 %v3395_v52, %v3399_v53  ;;  %v3410_v56 = vmax.f32 %v3386_v51, %v3401_v54  ;;  %v3388_v57 = vsel %vm3383_vm4, %v3385_v47, %v3387_v42 }
 0x1f9   : >> { %v3411_v58 = vmax.f32 %v3388_v57, %v3400_v41 }
 0x1fa   : >> { %v3413_v59 = vmax.f32 %v3371_v43, %v3409_v55  ;;  %v3414_v60 = vmax.f32 %v3372_v44, %v3410_v56 }
 0x1fb   : >> { %v3415_v62 = vmax.f32 %v3411_v58, 0.0 }
 0x1fc   : >> { %v5054_v63 = vpack.c.bf16 %v3414_v60, %v3413_v59 }
 0x1fd   : >> { %v5057_v0 = vpack.c.bf16 %v3416_v61, %v3415_v62 }
 0x1fe   : >> { %5055 = vmatpush3.bf16.msra.mxu0 %v5054_v63 }
 0x1ff   : >> { %5056 = vmatprep.subr.bf16.mxu0 %v5441_v25 }
 0x202   : >> { %5058 = vmatpush3.bf16.msra.mxu0 %v5057_v0 }
 0x203   : > { %5033 = vmatprep.subr.mxu0 (%p3338_p6), %v5444_v5 }
 0x205   : >> { %5031 = vmatmul.mubr.msk.f32.vlgmr.msra.gmra.mrb[0].mxu0 %vm3417_vm5, %v5829_v24 }
 0x206   : > { %5035 = vmatprep.mubr.msk.f32.mxu0 (%p3338_p6), %vm5445_vm14, %v5444_v5 }
 0x2d3   : > { %3340 = sbr.rel (!%p3338_p6) target bundleno = 488 (0x1e8), region = 95 }
 0x2d8   : >> { %v3487_v1 = vpop.f32.mrb[0].mxu0 }
 0x2d9   : >> { %3494 = vst.msk [vmem:[%s3492_s22] sm:$0xf] %vm3493_vm6, %v3487_v1  ;;  %v5032_v2 = vpop.f32.mrb[1].mxu0 }
 0x2e0   : > { %v3496_v3 = vld [vmem:[#allocation3] sm:$0x1]  ;;  %v3497_v4 = vld [vmem:[#allocation3 + $0x4] sm:$0x1]  ;;  %v3498_v6 = vld [vmem:[#allocation3 + $0x8] sm:$0x1] }
 0x2e1   : > { %v3499_v7 = vld [vmem:[#allocation3 + $0xc] sm:$0x1]  ;;  %v3500_v8 = vld [vmem:[#allocation3 + $0x10] sm:$0x1]  ;;  %v3501_v9 = vld [vmem:[#allocation3 + $0x14] sm:$0x1] }
 0x2e2   : > { %v3502_v10 = vld [vmem:[#allocation3 + $0x18] sm:$0x1]  ;;  %v3503_v11 = vld [vmem:[#allocation3 + $0x1c] sm:$0x1]  ;;  %v3512_v12 = vrot.slane %v3497_v4, 7  ;;  %v3515_v13 = vrot.slane %v3498_v6, 6 }
 0x2e3   : > { %v3518_v14 = vrot.slane %v3499_v7, 5  ;;  %v3521_v15 = vrot.slane %v3500_v8, 4  ;;  %v3524_v24 = vrot.slane %v3501_v9, 3  ;;  %v3611_v16 = vld [vmem:[#allocation3 + $0x5] sm:$0x1]  ;;  %v3527_v18 = vrot.slane %v3502_v10, 2 }
 0x2e4   : > { %v3514_v17 = vsel %vm3513_vm7, %v3512_v12, %v3496_v3  ;;  %v3610_v19 = vld [vmem:[#allocation3 + $0x1] sm:$0x1]  ;;  %v3612_v20 = vld [vmem:[#allocation3 + $0x9] sm:$0x1]  ;;  %v3530_v22 = vrot.slane %v3503_v11, 1  ;;  %v3626_v25 = vrot.slane %v3611_v16, 7 }
 0x2e5   : > { %v3517_v21 = vsel %vm3516_vm8, %v3515_v13, %v3514_v17  ;;  %v3613_v23 = vld [vmem:[#allocation3 + $0xd] sm:$0x1]  ;;  %v3614_v27 = vld [vmem:[#allocation3 + $0x11] sm:$0x1]  ;;  %v3615_v28 = vld [vmem:[#allocation3 + $0x15] sm:$0x1] }
 0x2e6   : > { %v3520_v26 = vsel %vm3519_vm9, %v3518_v14, %v3517_v21  ;;  %v3616_v29 = vld [vmem:[#allocation3 + $0x19] sm:$0x1]  ;;  %v3617_v31 = vld [vmem:[#allocation3 + $0x1d] sm:$0x1]  ;;  %v3628_v32 = vrot.slane %v3612_v20, 6  ;;  %v3630_v33 = vrot.slane %v3613_v23, 5  ;;  %v3627_v40 = vsel %vm3513_vm7, %v3626_v25, %v3610_v19 }
 0x2e7   : > { %v3523_v30 = vsel %vm3522_vm10, %v3521_v15, %v3520_v26  ;;  %v3632_v35 = vrot.slane %v3614_v27, 4  ;;  %v3634_v36 = vrot.slane %v3615_v28, 3  ;;  %v3636_v37 = vrot.slane %v3616_v29, 2  ;;  %v3713_v42 = vld [vmem:[#allocation3 + $0x2] sm:$0x1] }
 0x2e8   : > { %v3526_v34 = vsel %vm3525_vm11, %v3524_v24, %v3523_v30  ;;  %v3638_v41 = vrot.slane %v3617_v31, 1  ;;  %v3714_v43 = vld [vmem:[#allocation3 + $0x6] sm:$0x1]  ;;  %v3629_v45 = vsel %vm3516_vm8, %v3628_v32, %v3627_v40  ;;  %v3715_v46 = vld [vmem:[#allocation3 + $0xa] sm:$0x1] }
 0x2e9   : > { %v3529_v39 = vsel %vm3528_vm12, %v3527_v18, %v3526_v34  ;;  %v3716_v47 = vld [vmem:[#allocation3 + $0xe] sm:$0x1]  ;;  %v3717_v48 = vld [vmem:[#allocation3 + $0x12] sm:$0x1]  ;;  %v3631_v49 = vsel %vm3519_vm9, %v3630_v33, %v3629_v45  ;;  %v3718_v50 = vld [vmem:[#allocation3 + $0x16] sm:$0x1] }
 0x2ea   : > { %v3532_v44 = vsel %vm3531_vm13, %v3530_v22, %v3529_v39  ;;  %v3719_v51 = vld [vmem:[#allocation3 + $0x1a] sm:$0x1]  ;;  %v3720_v52 = vld [vmem:[#allocation3 + $0x1e] sm:$0x1]  ;;  %v3633_v53 = vsel %vm3522_vm10, %v3632_v35, %v3631_v49  ;;  %v3729_v54 = vrot.slane %v3714_v43, 7  ;;  %v3731_v55 = vrot.slane %v3715_v46, 6 }
 0x2eb   : > { %5034 = vmatpush3.msra.mxu0 %v3532_v44  ;;  %v3733_v56 = vrot.slane %v3716_v47, 5  ;;  %v3816_v57 = vld [vmem:[#allocation3 + $0x3] sm:$0x1]  ;;  %v3635_v58 = vsel %vm3525_vm11, %v3634_v36, %v3633_v53  ;;  %v3735_v59 = vrot.slane %v3717_v48, 4  ;;  %v3737_v60 = vrot.slane %v3718_v50, 3 }
 0x2ec   : > { %5036 = vmatmul.mubr.msk.f32.vlgmr.msra.gmra.mrb[0].mxu0 %vm3534_vm15, %v5991_v38  ;;  %5043 = vmatprep.subr.mxu0 %v5444_v5  ;;  %v3739_v61 = vrot.slane %v3719_v51, 2  ;;  %v3817_v62 = vld [vmem:[#allocation3 + $0x7] sm:$0x1]  ;;  %v3637_v63 = vsel %vm3528_vm12, %v3636_v37, %v3635_v58  ;;  %v3730_v0 = vsel %vm3513_vm7, %v3729_v54, %v3713_v42  ;;  %v3741_v1 = vrot.slane %v3720_v52, 1  ;;  %v3818_v2 = vld [vmem:[#allocation3 + $0xb] sm:$0x1] }
 0x2ed   : > { %5045 = vmatprep.mubr.msk.f32.mxu0 %vm5445_vm14, %v5444_v5  ;;  %v3819_v3 = vld [vmem:[#allocation3 + $0xf] sm:$0x1]  ;;  %v3832_v4 = vrot.slane %v3817_v62, 7  ;;  %v3639_v6 = vsel %vm3531_vm13, %v3638_v41, %v3637_v63  ;;  %v3732_v7 = vsel %vm3516_vm8, %v3731_v55, %v3730_v0  ;;  %v3820_v8 = vld [vmem:[#allocation3 + $0x13] sm:$0x1]  ;;  %v3834_v14 = vrot.slane %v3818_v2, 6 }
 0x2ee   : > { %v3821_v9 = vld [vmem:[#allocation3 + $0x17] sm:$0x1]  ;;  %v3822_v10 = vld [vmem:[#allocation3 + $0x1b] sm:$0x1]  ;;  %5039 = vmatpush3.msra.mxu1 %v3639_v6  ;;  %v3734_v11 = vsel %vm3519_vm9, %v3733_v56, %v3732_v7  ;;  %v3823_v12 = vld [vmem:[#allocation3 + $0x1f] sm:$0x1] }
 0x2ef   : > { %v3833_v13 = vsel %vm3513_vm7, %v3832_v4, %v3816_v57  ;;  %v3836_v15 = vrot.slane %v3819_v3, 5  ;;  %5041 = vmatmul.mubr.msk.f32.vlgmr.msra.gmra.mrb[0].mxu1 %vm3534_vm15, %v5991_v38  ;;  %5048 = vmatprep.subr.mxu1 %v5444_v5  ;;  %v3736_v24 = vsel %vm3522_vm10, %v3735_v59, %v3734_v11  ;;  %v3838_v16 = vrot.slane %v3820_v8, 4 }
 0x2f0   : > { %v3840_v17 = vrot.slane %v3821_v9, 3  ;;  %v3738_v18 = vsel %vm3525_vm11, %v3737_v60, %v3736_v24  ;;  %v3835_v19 = vsel %vm3516_vm8, %v3834_v14, %v3833_v13  ;;  %v3842_v20 = vrot.slane %v3822_v10, 2  ;;  %5050 = vmatprep.mubr.msk.f32.mxu1 %vm5445_vm14, %v5444_v5 }
 0x2f1   : > { %v3740_v21 = vsel %vm3528_vm12, %v3739_v61, %v3738_v18  ;;  %v3837_v22 = vsel %vm3519_vm9, %v3836_v15, %v3835_v19  ;;  %v3844_v23 = vrot.slane %v3823_v12, 1 }
 0x2f2   : > { %v3742_v26 = vsel %vm3531_vm13, %v3741_v1, %v3740_v21  ;;  %v3839_v27 = vsel %vm3522_vm10, %v3838_v16, %v3837_v22 }
 0x2f3   : > { %5044 = vmatpush3.msra.mxu0 %v3742_v26  ;;  %v3841_v28 = vsel %vm3525_vm11, %v3840_v17, %v3839_v27 }
 0x2f4   : > { %v3843_v29 = vsel %vm3528_vm12, %v3842_v20, %v3841_v28  ;;  %5046 = vmatmul.mubr.msk.f32.vlgmr.msra.gmra.mrb[2].mxu0 %vm3534_vm15, %v5991_v38 }
 0x2f5   : > { %v3845_v5 = vsel %vm3531_vm13, %v3844_v23, %v3843_v29 }
 0x2f6   : > { %5049 = vmatpush3.msra.mxu1 %v3845_v5 }
 0x2f7   : > { %5051 = vmatmul.mubr.msk.f32.vlgmr.msra.gmra.mrb[2].mxu1 %vm3534_vm15, %v5991_v38 }
 0x3bf   : > { %v3604_v30 = vpop.f32.mrb[0].mxu0 }
 0x3c0   : > { %3609 = vst.msk [vmem:[%s5510_s14] sm:$0xf] %vm3493_vm6, %v3604_v30  ;;  %v5037_v31 = vpop.f32.mrb[1].mxu0 }
 0x3c2   : > { %v3707_v25 = vpop.f32.mrb[0].mxu1 }
 0x3c3   : > { %4545 = vst.msk [vmem:[%s5510_s14 + $0x4] sm:$0xf] %vm3493_vm6, %v3707_v25  ;;  %v5042_v32 = vpop.f32.mrb[1].mxu1 }
 0x3c7   : > { %v3810_v33 = vpop.f32.mrb[2].mxu0 }
 0x3c8   : > { %4547 = vst.msk [vmem:[%s5510_s14 + $0x8] sm:$0xf] %vm3493_vm6, %v3810_v33  ;;  %v5047_v34 = vpop.f32.mrb[3].mxu0 }
 0x3ca   : > { %v3913_v35 = vpop.f32.mrb[2].mxu1 }
 0x3cb   : > { %4549 = vst.msk [vmem:[%s5510_s14 + $0xc] sm:$0xf] %vm3493_vm6, %v3913_v35  ;;  %v5052_v36 = vpop.f32.mrb[3].mxu1 }
 0x3cc PF: > { %s15_s18 = sadd.s32 1, %s5435_s18  }
 0x3cd   : > { %p12_p7 = scmp.ge.s32.totalorder %s15_s18, 4  }
 0x3cf   :  { %14 = sbr.rel (!%p12_p7) target bundleno = 1 (0x1), region = 106 }

</bundles_post_ra>
